<compile_context>
chip_gen: v7x
topology: tpu7x:2x2x1
jax: 0.10.0
libtpu: 0.0.40
codegen_flags: <defaults>
</compile_context>

<pallas_src>
import functools

import jax
import jax.numpy as jnp
from jax import lax
from jax.experimental import pallas as pl
from jax.experimental.pallas import tpu as pltpu

# Mirrors PyTorch _batch_hard's +9999999 masking for rows with no negative.
_NEG_FALLBACK_SQ = 9999999.0 ** 2


def _soft_triplet_kernel(xr_ref, xct_ref, sqr_ref, sqc_ref, labr_ref, labc_ref,
                         out_ref, maxp_ref, minn_ref, *, margin, n_valid, block_n):
    i = pl.program_id(0)
    j = pl.program_id(1)

    @pl.when(j == 0)
    def _init():
        maxp_ref[...] = jnp.full_like(maxp_ref, -jnp.inf)
        minn_ref[...] = jnp.full_like(minn_ref, jnp.inf)

    # 128-aligned dynamic slice into the VMEM-resident column vectors.
    col = pl.multiple_of(j * block_n, 128)
    sqc = sqc_ref[:, pl.ds(col, block_n)]        # (1, bn) 0.5*||x_j||^2 (sentinel if padded)
    labc = labc_ref[:, pl.ds(col, block_n)]      # (1, bn) labels (-1 if padded)

    # Monotone surrogate of the squared distance for this row block:
    #   dist2_ij = 2 * (t_ij + 0.5*||x_i||^2),  t_ij = 0.5*||x_j||^2 - <x_i,x_j>
    # Only one (bm,bn) subtract in the hot path; the affine correction happens
    # once per row block in _finalize.
    t = sqc - jnp.dot(xr_ref[...], xct_ref[...],
                      preferred_element_type=jnp.float32)          # (bm, bn) f32
    sim = labr_ref[...] == labc                                    # (bm, bn) bool

    # Online batch-hard mining (XLU lane reductions; masked selects feed them
    # directly so no extra full-tile temporaries stay live).
    maxp_ref[...] = jnp.maximum(
        maxp_ref[...],
        jnp.max(jnp.where(sim, t, -jnp.inf), axis=1, keepdims=True))
    minn_ref[...] = jnp.minimum(
        minn_ref[...],
        jnp.min(jnp.where(sim, jnp.inf, t), axis=1, keepdims=True))

    @pl.when(j == pl.num_programs(1) - 1)
    def _finalize():
        half_sq_i = sqr_ref[...]                                   # (bm, 1) 0.5*||x_i||^2
        d_ap2 = 2.0 * (maxp_ref[...] + half_sq_i)
        d_an2 = jnp.minimum(2.0 * (minn_ref[...] + half_sq_i), _NEG_FALLBACK_SQ)
        # sqrt only on the two mined (bm,1) vectors; euclidean_dist's 1e-12
        # clamp commutes with max/min, so results match the reference.
        d_ap = jnp.sqrt(jnp.maximum(d_ap2, 1e-12))
        d_an = jnp.sqrt(jnp.maximum(d_an2, 1e-12))
        m = jnp.maximum(d_ap, d_an)
        lse = m + jnp.log(jnp.exp(d_ap - m) + jnp.exp(d_an - m))
        row_loss = -margin * (d_ap - lse) - (1.0 - margin) * (d_an - lse)
        row_idx = i * maxp_ref.shape[0] + lax.broadcasted_iota(
            jnp.int32, row_loss.shape, 0)
        out_ref[...] = jnp.where(row_idx < n_valid, row_loss, 0.0)


def soft_triplet_loss(emb1, label, emb2=None, *, margin=0.3,
                      normalize_feature=False, block_m=256, block_n=256,
                      compute_dtype=None):
    """Pallas TPU forward of SoftTripletLoss (margin is not None, mid_hard=False).

    emb2 is accepted for signature parity with the PyTorch module but unused
    when margin is not None.  Real labels must be >= 0 (label -1 is reserved
    as the padding sentinel).
    """
    del emb2  # only used by the margin=None branch (not implemented)
    assert margin is not None  # TODO(synk): margin=None branch not implemented
    assert block_m % 8 == 0 and block_n % 128 == 0
    assert max(block_m, block_n) % min(block_m, block_n) == 0

    n, d = emb1.shape
    x = emb1
    if normalize_feature:
        xf = x.astype(jnp.float32)
        x = (xf / jnp.maximum(jnp.linalg.norm(xf, axis=1, keepdims=True),
                              1e-12)).astype(x.dtype)

    blk = max(block_m, block_n)
    n_pad = ((n + blk - 1) // blk) * blk
    bm = min(block_m, n_pad)
    bn = min(block_n, n_pad)

    if n_pad != n:
        x = jnp.pad(x, ((0, n_pad - n), (0, 0)))
    if compute_dtype is not None:
        x = x.astype(compute_dtype)        # bf16 Gram operands on v6e/v7x
    xt = x.T                               # (d, n_pad): plain (bm,d)x(d,bn) contraction

    # Padding labels are -1; real labels must be >= 0.
    lab = jnp.pad(label.reshape(-1).astype(jnp.int32), (0, n_pad - n),
                  constant_values=-1)

    # O(N*D) precompute outside the O(N^2*D) kernel. Half squared norms (the
    # x2 is folded into the finalize step); padded columns get a sentinel so
    # they can never win the hardest-negative min.
    xf32 = x.astype(jnp.float32)
    half_sq = 0.5 * jnp.sum(xf32 * xf32, axis=1)
    sq_row = half_sq.reshape(n_pad, 1)
    col_valid = jnp.arange(n_pad) < n
    sq_col = jnp.where(col_valid, half_sq, _NEG_FALLBACK_SQ).reshape(1, n_pad)
    lab_row, lab_col = lab.reshape(n_pad, 1), lab.reshape(1, n_pad)

    grid = (n_pad // bm, n_pad // bn)
    kernel = functools.partial(_soft_triplet_kernel, margin=float(margin),
                               n_valid=n, block_n=bn)

    itemsize = jnp.dtype(x.dtype).itemsize
    cost = pl.CostEstimate(
        flops=int(2 * n_pad * n_pad * d + 6 * n_pad * n_pad),
        transcendentals=int(5 * n_pad),
        bytes_accessed=int(n_pad * d * itemsize * (1 + grid[0]) + 24 * n_pad),
    )

    # Explicit VMEM budget (v7x physical VMEM is only 64 MiB): double-buffered
    # embedding tiles + resident column vectors + (bm,bn) intermediates.
    est_vmem = (
        2 * (bm * d + d * bn) * itemsize       # double-buffered embedding tiles
        + 2 * 2 * (n_pad * 4)                  # resident sq_col + lab_col
        + 2 * 3 * (bm * 4)                     # sq_row, lab_row, out blocks
        + 8 * bm * bn * 4                      # live (bm,bn) temporaries / spill room
        + 2 * bm * 4)                          # running max/min accumulators
    vmem_limit = int(min(48 * 1024 * 1024, max(32 * 1024 * 1024, 2 * est_vmem)))

    row_loss = pl.pallas_call(
        kernel,
        out_shape=jax.ShapeDtypeStruct((n_pad, 1), jnp.float32),
        grid_spec=pltpu.PrefetchScalarGridSpec(
            num_scalar_prefetch=0,
            grid=grid,
            in_specs=[
                pl.BlockSpec((bm, d), lambda i, j: (i, 0)),      # row embedding tile
                pl.BlockSpec((d, bn), lambda i, j: (0, j)),      # col embedding tile (pre-transposed)
                pl.BlockSpec((bm, 1), lambda i, j: (i, 0)),      # 0.5*||x_i||^2 (finalize only)
                pl.BlockSpec((1, n_pad), lambda i, j: (0, 0)),   # 0.5*||x_j||^2, VMEM-resident
                pl.BlockSpec((bm, 1), lambda i, j: (i, 0)),      # row labels
                pl.BlockSpec((1, n_pad), lambda i, j: (0, 0)),   # col labels, VMEM-resident
            ],
            out_specs=pl.BlockSpec((bm, 1), lambda i, j: (i, 0)),
            scratch_shapes=[pltpu.VMEM((bm, 1), jnp.float32),
                            pltpu.VMEM((bm, 1), jnp.float32)],
        ),
        compiler_params=pltpu.CompilerParams(
            dimension_semantics=("parallel", "arbitrary"),
            vmem_limit_bytes=vmem_limit),
        cost_estimate=cost,
    )(x, xt, sq_row, sq_col, lab_row, lab_col)

    # Finish the (tiny) mean on the host side of the call; padded rows are 0.
    return jnp.sum(row_loss) / n


def _reference(emb1, label, margin=0.3, normalize_feature=False):
    """Pure-JAX reference of the PyTorch forward (margin branch)."""
    x = emb1.astype(jnp.float32)
    if normalize_feature:
        x = x / jnp.maximum(jnp.linalg.norm(x, axis=1, keepdims=True), 1e-12)
    sq = jnp.sum(x * x, axis=1)
    dist = jnp.sqrt(jnp.maximum(sq[:, None] + sq[None, :] - 2.0 * x @ x.T, 1e-12))
    sim = label[:, None] == label[None, :]
    dist_ap = jnp.max(jnp.where(sim, dist, -jnp.inf), axis=1)
    dist_an = jnp.min(jnp.where(sim, jnp.inf, dist), axis=1)
    td = jnp.stack((dist_ap, dist_an), axis=1)
    lsm = jax.nn.log_softmax(td, axis=1)
    return jnp.mean(-margin * lsm[:, 0] - (1.0 - margin) * lsm[:, 1])


if __name__ == "__main__":
    key = jax.random.PRNGKey(0)
    k1, k2 = jax.random.split(key)

    # Small case: 8 identities x 4 samples, D=32 (single tile after padding).
    n1, d1 = 32, 32
    emb_a = jax.random.normal(k1, (n1, d1), dtype=jnp.float32)
    lab_a = jnp.repeat(jnp.arange(8, dtype=jnp.int32), 4)
    loss_a = soft_triplet_loss(emb_a, lab_a, margin=0.3)
    jax.block_until_ready(loss_a)
    ref_a = _reference(emb_a, lab_a, margin=0.3)
    assert jnp.allclose(loss_a, ref_a, rtol=1e-5, atol=1e-5), (loss_a, ref_a)

    # Multi-column-tile case: N=200 padded to 256, grid (1, 2). Exercises the
    # online mining across column steps and the resident sq/label slicing.
    n2, d2 = 200, 32
    emb_b = jax.random.normal(k2, (n2, d2), dtype=jnp.float32)
    lab_b = jnp.repeat(jnp.arange(25, dtype=jnp.int32), 8)
    loss_b = soft_triplet_loss(emb_b, lab_b, margin=0.3, block_m=256, block_n=128)
    jax.block_until_ready(loss_b)
    ref_b = _reference(emb_b, lab_b, margin=0.3)
    assert jnp.allclose(loss_b, ref_b, rtol=1e-5, atol=1e-5), (loss_b, ref_b)

    # Multi-row-tile case: grid (2, 2). Exercises the parallel row axis and
    # the row/column padding masks.
    loss_c = soft_triplet_loss(emb_b, lab_b, margin=0.3, block_m=128, block_n=128)
    jax.block_until_ready(loss_c)
    assert jnp.allclose(loss_c, ref_b, rtol=1e-5, atol=1e-5), (loss_c, ref_b)

    # bf16 Gram operands (v6e/v7x MXU path); mining / log-softmax stay f32.
    loss_d = soft_triplet_loss(emb_b, lab_b, margin=0.3,
                               compute_dtype=jnp.bfloat16)
    jax.block_until_ready(loss_d)
    assert jnp.allclose(loss_d, ref_b, rtol=5e-2, atol=5e-2), (loss_d, ref_b)

    print("KERNEL_OK")
</pallas_src>

<mosaic_0001>
module attributes {stable_mosaic.version = 11 : i64} {
  func.func @_soft_triplet_kernel(%arg0: i32, %arg1: i32, %arg2: memref<256x32xf32, #tpu.memory_space<vmem>>, %arg3: memref<32x256xf32, #tpu.memory_space<vmem>>, %arg4: memref<256x1xf32, #tpu.memory_space<vmem>>, %arg5: memref<1x256xf32, #tpu.memory_space<vmem>>, %arg6: memref<256x1xi32, #tpu.memory_space<vmem>>, %arg7: memref<1x256xi32, #tpu.memory_space<vmem>>, %arg8: memref<256x1xf32, #tpu.memory_space<vmem>>, %arg9: memref<256x1xf32, #tpu.memory_space<vmem>>, %arg10: memref<256x1xf32, #tpu.memory_space<vmem>>) attributes {dimension_semantics = [#tpu.dimension_semantics<parallel>, #tpu.dimension_semantics<arbitrary>], iteration_bounds = array<i64: 1, 1>, scalar_prefetch = 0 : i64, scratch_operands = 2 : i64, tpu.core_type = #tpu.core_type<tc>, window_params = [{transform_indices = @transform_0, window_bounds = array<i64: 256, 32>}, {transform_indices = @transform_1, window_bounds = array<i64: 32, 256>}, {transform_indices = @transform_2, window_bounds = array<i64: 256, 1>}, {pipeline_mode = #tpu.pipeline_mode<synchronous>, transform_indices = @transform_3, window_bounds = array<i64: 1, 256>}, {transform_indices = @transform_4, window_bounds = array<i64: 256, 1>}, {pipeline_mode = #tpu.pipeline_mode<synchronous>, transform_indices = @transform_5, window_bounds = array<i64: 1, 256>}, {transform_indices = @transform_6, window_bounds = array<i64: 256, 1>}]} {
    %c0_i32 = arith.constant 0 : i32
    %0 = arith.cmpi eq, %arg1, %c0_i32 : i32
    %1 = arith.extui %0 : i1 to i32
    %c0_i32_0 = arith.constant 0 : i32
    %2 = arith.cmpi ne, %1, %c0_i32_0 : i32
    scf.if %2 {
      %cst_22 = arith.constant 0xFF800000 : f32
      %35 = vector.broadcast %cst_22 : f32 to vector<256x1xf32>
      %c0_23 = arith.constant 0 : index
      %c0_24 = arith.constant 0 : index
      %36 = vector.load %arg9[%c0_23, %c0_24] : memref<256x1xf32, #tpu.memory_space<vmem>>, vector<256x1xf32>
      tpu.vector_store %arg9[%c0_23, %c0_24], %35 {strides = array<i32>} : memref<256x1xf32, #tpu.memory_space<vmem>>, vector<256x1xf32>,
      %cst_25 = arith.constant 0x7F800000 : f32
      %37 = vector.broadcast %cst_25 : f32 to vector<256x1xf32>
      %c0_26 = arith.constant 0 : index
      %c0_27 = arith.constant 0 : index
      %38 = vector.load %arg10[%c0_26, %c0_27] : memref<256x1xf32, #tpu.memory_space<vmem>>, vector<256x1xf32>
      tpu.vector_store %arg10[%c0_26, %c0_27], %37 {strides = array<i32>} : memref<256x1xf32, #tpu.memory_space<vmem>>, vector<256x1xf32>,
    } else {
    }
    %c256_i32 = arith.constant 256 : i32
    %3 = arith.muli %arg1, %c256_i32 : i32
    %4 = tpu.assume_multiple %3, 128 : i32
    %c0 = arith.constant 0 : index
    %5 = arith.index_cast %4 : i32 to index
    %6 = vector.load %arg5[%c0, %5] : memref<1x256xf32, #tpu.memory_space<vmem>>, vector<1x256xf32>
    %c0_1 = arith.constant 0 : index
    %7 = arith.index_cast %4 : i32 to index
    %8 = vector.load %arg7[%c0_1, %7] : memref<1x256xi32, #tpu.memory_space<vmem>>, vector<1x256xi32>
    %c0_2 = arith.constant 0 : index
    %c0_3 = arith.constant 0 : index
    %9 = vector.load %arg2[%c0_2, %c0_3] : memref<256x32xf32, #tpu.memory_space<vmem>>, vector<256x32xf32>
    %c0_4 = arith.constant 0 : index
    %c0_5 = arith.constant 0 : index
    %10 = vector.load %arg3[%c0_4, %c0_5] : memref<32x256xf32, #tpu.memory_space<vmem>>, vector<32x256xf32>
    %cst = arith.constant dense<0.000000e+00> : vector<256x256xf32>
    %11 = tpu.matmul %9, %10, %cst {dimension_numbers = #tpu.dot_dimension_numbers<[1], [0], [0], [1], [0, 0, 1, 1], [], []>} : vector<256x32xf32>, vector<32x256xf32>, vector<256x256xf32> -> vector<256x256xf32>
    %12 = vector.broadcast %6 : vector<1x256xf32> to vector<256x256xf32>
    %13 = arith.subf %12, %11 : vector<256x256xf32>
    %c0_6 = arith.constant 0 : index
    %c0_7 = arith.constant 0 : index
    %14 = vector.load %arg6[%c0_6, %c0_7] : memref<256x1xi32, #tpu.memory_space<vmem>>, vector<256x1xi32>
    %15 = vector.broadcast %14 : vector<256x1xi32> to vector<256x256xi32>
    %16 = vector.broadcast %8 : vector<1x256xi32> to vector<256x256xi32>
    %17 = arith.cmpi eq, %15, %16 : vector<256x256xi32>
    %c0_8 = arith.constant 0 : index
    %c0_9 = arith.constant 0 : index
    %18 = vector.load %arg9[%c0_8, %c0_9] : memref<256x1xf32, #tpu.memory_space<vmem>>, vector<256x1xf32>
    %cst_10 = arith.constant 0xFF800000 : f32
    %19 = vector.broadcast %cst_10 : f32 to vector<256x256xf32>
    %20 = arith.select %17, %13, %19 : vector<256x256xi1>, vector<256x256xf32>
    %cst_11 = arith.constant dense<0xFF800000> : vector<256xf32>
    %21 = vector.multi_reduction <maximumf>, %20, %cst_11 [1] : vector<256x256xf32> to vector<256xf32>
    %22 = vector.shape_cast %21 : vector<256xf32> to vector<256x1xf32>
    %23 = arith.maximumf %18, %22 : vector<256x1xf32>
    %c0_12 = arith.constant 0 : index
    %c0_13 = arith.constant 0 : index
    %24 = vector.load %arg9[%c0_12, %c0_13] : memref<256x1xf32, #tpu.memory_space<vmem>>, vector<256x1xf32>
    tpu.vector_store %arg9[%c0_12, %c0_13], %23 {strides = array<i32>} : memref<256x1xf32, #tpu.memory_space<vmem>>, vector<256x1xf32>,
    %c0_14 = arith.constant 0 : index
    %c0_15 = arith.constant 0 : index
    %25 = vector.load %arg10[%c0_14, %c0_15] : memref<256x1xf32, #tpu.memory_space<vmem>>, vector<256x1xf32>
    %cst_16 = arith.constant 0x7F800000 : f32
    %26 = vector.broadcast %cst_16 : f32 to vector<256x256xf32>
    %27 = arith.select %17, %26, %13 : vector<256x256xi1>, vector<256x256xf32>
    %cst_17 = arith.constant dense<0x7F800000> : vector<256xf32>
    %28 = vector.multi_reduction <minimumf>, %27, %cst_17 [1] : vector<256x256xf32> to vector<256xf32>
    %29 = vector.shape_cast %28 : vector<256xf32> to vector<256x1xf32>
    %30 = arith.minimumf %25, %29 : vector<256x1xf32>
    %c0_18 = arith.constant 0 : index
    %c0_19 = arith.constant 0 : index
    %31 = vector.load %arg10[%c0_18, %c0_19] : memref<256x1xf32, #tpu.memory_space<vmem>>, vector<256x1xf32>
    tpu.vector_store %arg10[%c0_18, %c0_19], %30 {strides = array<i32>} : memref<256x1xf32, #tpu.memory_space<vmem>>, vector<256x1xf32>,
    %c0_i32_20 = arith.constant 0 : i32
    %32 = arith.cmpi eq, %arg1, %c0_i32_20 : i32
    %33 = arith.extui %32 : i1 to i32
    %c0_i32_21 = arith.constant 0 : i32
    %34 = arith.cmpi ne, %33, %c0_i32_21 : i32
    scf.if %34 {
      %c0_22 = arith.constant 0 : index
      %c0_23 = arith.constant 0 : index
      %35 = vector.load %arg4[%c0_22, %c0_23] : memref<256x1xf32, #tpu.memory_space<vmem>>, vector<256x1xf32>
      %c0_24 = arith.constant 0 : index
      %c0_25 = arith.constant 0 : index
      %36 = vector.load %arg9[%c0_24, %c0_25] : memref<256x1xf32, #tpu.memory_space<vmem>>, vector<256x1xf32>
      %37 = arith.addf %36, %35 : vector<256x1xf32>
      %cst_26 = arith.constant 2.000000e+00 : f32
      %38 = vector.broadcast %cst_26 : f32 to vector<256x1xf32>
      %39 = arith.mulf %38, %37 : vector<256x1xf32>
      %c0_27 = arith.constant 0 : index
      %c0_28 = arith.constant 0 : index
      %40 = vector.load %arg10[%c0_27, %c0_28] : memref<256x1xf32, #tpu.memory_space<vmem>>, vector<256x1xf32>
      %41 = arith.addf %40, %35 : vector<256x1xf32>
      %cst_29 = arith.constant 2.000000e+00 : f32
      %42 = vector.broadcast %cst_29 : f32 to vector<256x1xf32>
      %43 = arith.mulf %42, %41 : vector<256x1xf32>
      %cst_30 = arith.constant 9.99999835E+13 : f32
      %44 = vector.broadcast %cst_30 : f32 to vector<256x1xf32>
      %45 = arith.minimumf %43, %44 : vector<256x1xf32>
      %cst_31 = arith.constant 9.99999996E-13 : f32
      %46 = vector.broadcast %cst_31 : f32 to vector<256x1xf32>
      %47 = arith.maximumf %39, %46 : vector<256x1xf32>
      %48 = math.sqrt %47 : vector<256x1xf32>
      %cst_32 = arith.constant 9.99999996E-13 : f32
      %49 = vector.broadcast %cst_32 : f32 to vector<256x1xf32>
      %50 = arith.maximumf %45, %49 : vector<256x1xf32>
      %51 = math.sqrt %50 : vector<256x1xf32>
      %52 = arith.maximumf %48, %51 : vector<256x1xf32>
      %53 = arith.subf %48, %52 : vector<256x1xf32>
      %54 = math.exp %53 : vector<256x1xf32>
      %55 = arith.subf %51, %52 : vector<256x1xf32>
      %56 = math.exp %55 : vector<256x1xf32>
      %57 = arith.addf %54, %56 : vector<256x1xf32>
      %58 = math.log %57 : vector<256x1xf32>
      %59 = arith.addf %52, %58 : vector<256x1xf32>
      %60 = arith.subf %48, %59 : vector<256x1xf32>
      %cst_33 = arith.constant -3.000000e-01 : f32
      %61 = vector.broadcast %cst_33 : f32 to vector<256x1xf32>
      %62 = arith.mulf %61, %60 : vector<256x1xf32>
      %63 = arith.subf %51, %59 : vector<256x1xf32>
      %cst_34 = arith.constant 0.699999988 : f32
      %64 = vector.broadcast %cst_34 : f32 to vector<256x1xf32>
      %65 = arith.mulf %64, %63 : vector<256x1xf32>
      %66 = arith.subf %62, %65 : vector<256x1xf32>
      %c256_i32_35 = arith.constant 256 : i32
      %67 = arith.muli %arg0, %c256_i32_35 : i32
      %68 = tpu.iota {dimensions = array<i32: 0>} : vector<256x1xi32>
      %69 = vector.broadcast %67 : i32 to vector<256x1xi32>
      %70 = arith.addi %69, %68 : vector<256x1xi32>
      %c32_i32 = arith.constant 32 : i32
      %71 = vector.broadcast %c32_i32 : i32 to vector<256x1xi32>
      %72 = arith.cmpi slt, %70, %71 : vector<256x1xi32>
      %cst_36 = arith.constant 0.000000e+00 : f32
      %73 = vector.broadcast %cst_36 : f32 to vector<256x1xf32>
      %74 = arith.select %72, %66, %73 : vector<256x1xi1>, vector<256x1xf32>
      %c0_37 = arith.constant 0 : index
      %c0_38 = arith.constant 0 : index
      %75 = vector.load %arg8[%c0_37, %c0_38] : memref<256x1xf32, #tpu.memory_space<vmem>>, vector<256x1xf32>
      tpu.vector_store %arg8[%c0_37, %c0_38], %74 {strides = array<i32>} : memref<256x1xf32, #tpu.memory_space<vmem>>, vector<256x1xf32>,
    } else {
    }
    return
  }
  func.func @transform_0(%arg0: i32, %arg1: i32) -> (i32, i32) {
    %c0_i32 = arith.constant 0 : i32
    %c0_i32_0 = arith.constant 0 : i32
    return %arg0, %c0_i32 : i32, i32
  }
  func.func @transform_1(%arg0: i32, %arg1: i32) -> (i32, i32) {
    %c0_i32 = arith.constant 0 : i32
    %c0_i32_0 = arith.constant 0 : i32
    return %c0_i32, %arg1 : i32, i32
  }
  func.func @transform_2(%arg0: i32, %arg1: i32) -> (i32, i32) {
    %c0_i32 = arith.constant 0 : i32
    %c0_i32_0 = arith.constant 0 : i32
    return %arg0, %c0_i32 : i32, i32
  }
  func.func @transform_3(%arg0: i32, %arg1: i32) -> (i32, i32) {
    %c0_i32 = arith.constant 0 : i32
    %c0_i32_0 = arith.constant 0 : i32
    %c0_i32_1 = arith.constant 0 : i32
    return %c0_i32, %c0_i32_0 : i32, i32
  }
  func.func @transform_4(%arg0: i32, %arg1: i32) -> (i32, i32) {
    %c0_i32 = arith.constant 0 : i32
    %c0_i32_0 = arith.constant 0 : i32
    return %arg0, %c0_i32 : i32, i32
  }
  func.func @transform_5(%arg0: i32, %arg1: i32) -> (i32, i32) {
    %c0_i32 = arith.constant 0 : i32
    %c0_i32_0 = arith.constant 0 : i32
    %c0_i32_1 = arith.constant 0 : i32
    return %c0_i32, %c0_i32_0 : i32, i32
  }
  func.func @transform_6(%arg0: i32, %arg1: i32) -> (i32, i32) {
    %c0_i32 = arith.constant 0 : i32
    %c0_i32_0 = arith.constant 0 : i32
    return %arg0, %c0_i32 : i32, i32
  }
}

</mosaic_0001>

<bundles_post_ra>
// kernel: tpu_custom_call.1
= control target key start
LH: loop header
LB: loop body
LE: loop exit
PB: predicated region body
PF: predicated region fallthrough
CT: control target
= control target key end

     0   :  { %v4737_v3 = vmov 0.0   ;;  %v2824_v8 = vmov 0   ;;  %vm139_vm0 = vcmask 261120   ;;  %s4730_s1 = inlined_call_operand.vmem [shape: f32[32,256], index: 1, kind: input, shape index: {}]   ;;  %s4731_s4 = inlined_call_operand.vmem [shape: s32[256,1], index: 4, kind: input, shape index: {}]   ;;  %s4732_s0 = inlined_call_operand.vmem [shape: f32[256,32], index: 0, kind: input, shape index: {}]   ;;  %s4733_s5 = inlined_call_operand.vmem [shape: s32[1,256], index: 5, kind: input, shape index: {}]   ;;  %s4734_s3 = inlined_call_operand.vmem [shape: f32[1,256], index: 3, kind: input, shape index: {}]   ;;  %s4735_s6 = inlined_call_operand.vmem [shape: f32[256,1], index: 6, kind: output, shape index: {}]   ;;  %s4736_s2 = inlined_call_operand.vmem [shape: f32[256,1], index: 2, kind: input, shape index: {}]  }
   0x1   :  { %v132_v0 = vld [vmem:[%s4730_s1 + $0x8] sm:$0xff]  ;;  %v134_v1 = vld [vmem:[%s4730_s1 + $0x18] sm:$0xff]  ;;  %v131_v2 = vld [vmem:[%s4730_s1] sm:$0xff]  ;;  %300 = vmatprep.mubr.f32.mxu0 %v4737_v3  ;;  %396 = vmatprep.mubr.f32.mxu1 %v4737_v3 }
   0x2   :  { %v2765_v4 = vpack.c.bf16 %v134_v1, %v132_v0  ;;  %v133_v5 = vld [vmem:[%s4730_s1 + $0x10] sm:$0xff]  ;;  %v136_v6 = vld [vmem:[%s4730_s1 + $0x28] sm:$0xff]  ;;  %v138_v7 = vld [vmem:[%s4730_s1 + $0x38] sm:$0xff]  ;;  %2782 = vset.pattern.permute.xlu1 %v2824_v8  ;;  %2781 = vset.pattern.permute.xlu0 %v2824_v8 }
   0x3   :  { %v2767_v9 = vpack.c.bf16 %v133_v5, %v131_v2  ;;  %v2769_v10 = vpack.c.bf16 %v138_v7, %v136_v6  ;;  %v135_v11 = vld [vmem:[%s4730_s1 + $0x20] sm:$0xff]  ;;  %v137_v12 = vld [vmem:[%s4730_s1 + $0x30] sm:$0xff]  ;;  %v571_v16 = vld [vmem:[%s4731_s4 + $0x18] sm:$0xff] }
   0x4   :  { %2766 = vmatprep.subr.bf16.mxu0 %v2765_v4  ;;  %2773 = vmatprep.subr.bf16.mxu1 %v2765_v4  ;;  %v570_v13 = vld [vmem:[%s4731_s4 + $0x10] sm:$0xff]  ;;  %v2771_v14 = vpack.c.bf16 %v137_v12, %v135_v11  ;;  %v568_v15 = vld [vmem:[%s4731_s4] sm:$0xff]  ;;  %v569_v17 = vld [vmem:[%s4731_s4 + $0x8] sm:$0xff] }
   0x5   :  { %2768 = vmatpush1.bf16.msra.mxu0 %v2767_v9  ;;  %2775 = vmatpush1.bf16.msra.mxu1 %v2767_v9  ;;  %v99_v18 = vld [vmem:[%s4732_s0] sm:$0xff]  ;;  %v573_v20 = vld [vmem:[%s4731_s4 + $0x28] sm:$0xff]  ;;  %v575_v24 = vld [vmem:[%s4731_s4 + $0x38] sm:$0xff] }
   0x6   :  { %2770 = vmatprep.subr.bf16.mxu0 %v2769_v10  ;;  %2774 = vmatprep.subr.bf16.mxu1 %v2769_v10  ;;  %v115_v19 = vld [vmem:[%s4732_s0 + $0x80] sm:$0xff]  ;;  %v100_v22 = vld [vmem:[%s4732_s0 + $0x8] sm:$0xff]  ;;  %v574_v25 = vld [vmem:[%s4731_s4 + $0x30] sm:$0xff] }
   0x7   :  { %607 = vperm.xlu1 %2782, %v570_v13   ;;  %601 = vperm.xlu0 %2781, %v568_v15   ;;  %v572_v21 = vld [vmem:[%s4731_s4 + $0x20] sm:$0xff]  ;;  %v116_v23 = vld [vmem:[%s4732_s0 + $0x88] sm:$0xff]  ;;  %v101_v26 = vld [vmem:[%s4732_s0 + $0x10] sm:$0xff] }
   0x8   :  { %v117_v27 = vld [vmem:[%s4732_s0 + $0x90] sm:$0xff]  ;;  %v577_v28 = vld [vmem:[%s4731_s4 + $0x48] sm:$0xff]  ;;  %v576_v29 = vld [vmem:[%s4731_s4 + $0x40] sm:$0xff] }
   0x9   :  { %2772 = vmatpush1.bf16.msra.mxu0 %v2771_v14  ;;  %2776 = vmatpush1.bf16.msra.mxu1 %v2771_v14  ;;  %v102_v30 = vld [vmem:[%s4732_s0 + $0x18] sm:$0xff]  ;;  %v578_v33 = vld [vmem:[%s4731_s4 + $0x50] sm:$0xff]  ;;  %v103_v34 = vld [vmem:[%s4732_s0 + $0x20] sm:$0xff] }
   0xa   :  { %v118_v31 = vld [vmem:[%s4732_s0 + $0x98] sm:$0xff]  ;;  %v119_v35 = vld [vmem:[%s4732_s0 + $0xa0] sm:$0xff]  ;;  %v581_v36 = vld [vmem:[%s4731_s4 + $0x68] sm:$0xff] }
   0xb   :  { %610 = vperm.xlu1 %2782, %v571_v16   ;;  %604 = vperm.xlu0 %2781, %v569_v17   ;;  %v579_v32 = vld [vmem:[%s4731_s4 + $0x58] sm:$0xff]  ;;  %v580_v37 = vld [vmem:[%s4731_s4 + $0x60] sm:$0xff]  ;;  %v104_v38 = vld [vmem:[%s4732_s0 + $0x28] sm:$0xff]  ;;  %v494_v17 = vlaneseq }
   0xc   :  { %2733 = vmatmul.mubr.msk.f32.vlgmr.msra.gmra.mrb[0].mxu0 %vm139_vm0, %v99_v18  ;;  %2749 = vmatmul.mubr.msk.f32.vlgmr.msra.gmra.mrb[0].mxu1 %vm139_vm0, %v115_v19  ;;  %v120_v39 = vld [vmem:[%s4732_s0 + $0xa8] sm:$0xff]  ;;  %v583_v40 = vld [vmem:[%s4731_s4 + $0x78] sm:$0xff]  ;;  %v582_v41 = vld [vmem:[%s4731_s4 + $0x70] sm:$0xff] }
   0xd   :  { %306 = vmatprep.mubr.f32.mxu0 %v4737_v3  ;;  %402 = vmatprep.mubr.f32.mxu1 %v4737_v3  ;;  %v105_v42 = vld [vmem:[%s4732_s0 + $0x30] sm:$0xff]  ;;  %v585_v44 = vld [vmem:[%s4731_s4 + $0x88] sm:$0xff]  ;;  %v584_v45 = vld [vmem:[%s4731_s4 + $0x80] sm:$0xff] }
   0xe   :  { %v121_v43 = vld [vmem:[%s4732_s0 + $0xb0] sm:$0xff]  ;;  %v106_v46 = vld [vmem:[%s4732_s0 + $0x38] sm:$0xff]  ;;  %v107_v50 = vld [vmem:[%s4732_s0 + $0x40] sm:$0xff] }
   0xf   :  { %616 = vperm.xlu1 %2782, %v573_v20   ;;  %613 = vperm.xlu0 %2781, %v572_v21   ;;  %v122_v47 = vld [vmem:[%s4732_s0 + $0xb8] sm:$0xff]  ;;  %v586_v49 = vld [vmem:[%s4731_s4 + $0x90] sm:$0xff]  ;;  %v123_v51 = vld [vmem:[%s4732_s0 + $0xc0] sm:$0xff]  ;;  %v495_v20 = vshrl.u32 %v494_v17, 7 }
  0x10   :  { %2734 = vmatmul.mubr.msk.f32.gmra.mrb[2].mxu0 %vm139_vm0, %v100_v22  ;;  %2750 = vmatmul.mubr.msk.f32.gmra.mrb[2].mxu1 %vm139_vm0, %v116_v23  ;;  %v587_v48 = vld [vmem:[%s4731_s4 + $0x98] sm:$0xff]  ;;  %v589_v52 = vld [vmem:[%s4731_s4 + $0xa8] sm:$0xff]  ;;  %v588_v53 = vld [vmem:[%s4731_s4 + $0xa0] sm:$0xff] }
  0x11   :  { %312 = vmatprep.mubr.f32.mxu0 %v4737_v3  ;;  %408 = vmatprep.mubr.f32.mxu1 %v4737_v3  ;;  %v108_v54 = vld [vmem:[%s4732_s0 + $0x48] sm:$0xff]  ;;  %v591_v56 = vld [vmem:[%s4731_s4 + $0xb8] sm:$0xff]  ;;  %v590_v57 = vld [vmem:[%s4731_s4 + $0xb0] sm:$0xff]  ;;  %v496_v23 = vsub.s32 0, %v495_v20 }
  0x12   :  { %v124_v55 = vld [vmem:[%s4732_s0 + $0xc8] sm:$0xff]  ;;  %v109_v58 = vld [vmem:[%s4732_s0 + $0x50] sm:$0xff]  ;;  %v592_v61 = vld [vmem:[%s4731_s4 + $0xc0] sm:$0xff] }
  0x13   :  { %622 = vperm.xlu1 %2782, %v575_v24   ;;  %619 = vperm.xlu0 %2781, %v574_v25   ;;  %v125_v59 = vld [vmem:[%s4732_s0 + $0xd0] sm:$0xff]  ;;  %v593_v60 = vld [vmem:[%s4731_s4 + $0xc8] sm:$0xff]  ;;  %v110_v62 = vld [vmem:[%s4732_s0 + $0x58] sm:$0xff]  ;;  %v500_v24 = vsub.s32 1, %v495_v20 }
  0x14   :  { %2735 = vmatmul.mubr.msk.f32.gmra.mrb[4].mxu0 %vm139_vm0, %v101_v26  ;;  %2751 = vmatmul.mubr.msk.f32.gmra.mrb[4].mxu1 %vm139_vm0, %v117_v27  ;;  %v126_v63 = vld [vmem:[%s4732_s0 + $0xd8] sm:$0xff]  ;;  %v594_v1 = vld [vmem:[%s4731_s4 + $0xd0] sm:$0xff]  ;;  %v111_v2 = vld [vmem:[%s4732_s0 + $0x60] sm:$0xff] }
  0x15   :  { %318 = vmatprep.mubr.f32.mxu0 %v4737_v3  ;;  %414 = vmatprep.mubr.f32.mxu1 %v4737_v3  ;;  %v595_v0 = vld [vmem:[%s4731_s4 + $0xd8] sm:$0xff]  ;;  %v127_v4 = vld [vmem:[%s4732_s0 + $0xe0] sm:$0xff]  ;;  %v597_v5 = vld [vmem:[%s4731_s4 + $0xe8] sm:$0xff] }
  0x16   :  { %v596_v6 = vld [vmem:[%s4731_s4 + $0xe0] sm:$0xff]  ;;  %v112_v7 = vld [vmem:[%s4732_s0 + $0x68] sm:$0xff]  ;;  %v599_v9 = vld [vmem:[%s4731_s4 + $0xf8] sm:$0xff] }
  0x17   :  { %628 = vperm.xlu1 %2782, %v577_v28   ;;  %625 = vperm.xlu0 %2781, %v576_v29   ;;  %v128_v8 = vld [vmem:[%s4732_s0 + $0xe8] sm:$0xff]  ;;  %v598_v10 = vld [vmem:[%s4731_s4 + $0xf0] sm:$0xff]  ;;  %v114_v13 = vld [vmem:[%s4732_s0 + $0x78] sm:$0xff] }
  0x18   :  { %2736 = vmatmul.mubr.msk.f32.gmra.mrb[6].mxu0 %vm139_vm0, %v102_v30  ;;  %2752 = vmatmul.mubr.msk.f32.gmra.mrb[6].mxu1 %vm139_vm0, %v118_v31  ;;  %v113_v11 = vld [vmem:[%s4732_s0 + $0x70] sm:$0xff]  ;;  %v130_v14 = vld [vmem:[%s4732_s0 + $0xf8] sm:$0xff]  ;;  %v98_v25 = vld [vmem:[%s4733_s5] sm:$0x3] }
  0x19   :  { %324 = vmatprep.mubr.f32.mxu0 %v4737_v3  ;;  %420 = vmatprep.mubr.f32.mxu1 %v4737_v3  ;;  %v129_v12 = vld [vmem:[%s4732_s0 + $0xf0] sm:$0xff]  ;;  %v3161_v28 = vrot.slane %v98_v25, %v496_v23  ;;  %v3163_v29 = vrot.slane %v98_v25, %v500_v24 }
  0x1b   :  { %634 = vperm.xlu1 %2782, %v579_v32   ;;  %631 = vperm.xlu0 %2781, %v578_v33  }
  0x1c   :  { %2737 = vmatmul.mubr.msk.f32.gmra.mrb[8].mxu0 %vm139_vm0, %v103_v34  ;;  %2753 = vmatmul.mubr.msk.f32.gmra.mrb[8].mxu1 %vm139_vm0, %v119_v35 }
  0x1d   :  { %330 = vmatprep.mubr.f32.mxu0 %v4737_v3  ;;  %426 = vmatprep.mubr.f32.mxu1 %v4737_v3 }
  0x1f   :  { %640 = vperm.xlu1 %2782, %v581_v36   ;;  %637 = vperm.xlu0 %2781, %v580_v37  }
  0x20   :  { %2738 = vmatmul.mubr.msk.f32.gmra.mrb[10].mxu0 %vm139_vm0, %v104_v38  ;;  %2754 = vmatmul.mubr.msk.f32.gmra.mrb[10].mxu1 %vm139_vm0, %v120_v39  ;;  %v96_v39 = vld [vmem:[%s4734_s3] sm:$0x3] }
  0x21   :  { %336 = vmatprep.mubr.f32.mxu0 %v4737_v3  ;;  %432 = vmatprep.mubr.f32.mxu1 %v4737_v3 }
  0x23   :  { %646 = vperm.xlu1 %2782, %v583_v40   ;;  %643 = vperm.xlu0 %2781, %v582_v41   ;;  %v3212_v41 = vrot.slane %v96_v39, %v496_v23 }
  0x24   :  { %2739 = vmatmul.mubr.msk.f32.gmra.mrb[12].mxu0 %vm139_vm0, %v105_v42  ;;  %2755 = vmatmul.mubr.msk.f32.gmra.mrb[12].mxu1 %vm139_vm0, %v121_v43  ;;  %v3214_v42 = vrot.slane %v96_v39, %v500_v24 }
  0x25   :  { %342 = vmatprep.mubr.f32.mxu0 %v4737_v3  ;;  %438 = vmatprep.mubr.f32.mxu1 %v4737_v3 }
  0x27   :  { %652 = vperm.xlu1 %2782, %v585_v44   ;;  %649 = vperm.xlu0 %2781, %v584_v45  }
  0x28   :  { %2740 = vmatmul.mubr.msk.f32.gmra.mrb[14].mxu0 %vm139_vm0, %v106_v46  ;;  %2756 = vmatmul.mubr.msk.f32.gmra.mrb[14].mxu1 %vm139_vm0, %v122_v47 }
  0x29   :  { %348 = vmatprep.mubr.f32.mxu0 %v4737_v3  ;;  %444 = vmatprep.mubr.f32.mxu1 %v4737_v3 }
  0x2b   :  { %658 = vperm.xlu1 %2782, %v587_v48   ;;  %655 = vperm.xlu0 %2781, %v586_v49  }
  0x2c   :  { %2741 = vmatmul.mubr.msk.f32.gmra.mrb[16].mxu0 %vm139_vm0, %v107_v50  ;;  %2757 = vmatmul.mubr.msk.f32.gmra.mrb[16].mxu1 %vm139_vm0, %v123_v51 }
  0x2d   :  { %354 = vmatprep.mubr.f32.mxu0 %v4737_v3  ;;  %450 = vmatprep.mubr.f32.mxu1 %v4737_v3 }
  0x2f   :  { %664 = vperm.xlu1 %2782, %v589_v52   ;;  %661 = vperm.xlu0 %2781, %v588_v53  }
  0x30   :  { %2742 = vmatmul.mubr.msk.f32.gmra.mrb[18].mxu0 %vm139_vm0, %v108_v54  ;;  %2758 = vmatmul.mubr.msk.f32.gmra.mrb[18].mxu1 %vm139_vm0, %v124_v55 }
  0x31   :  { %360 = vmatprep.mubr.f32.mxu0 %v4737_v3  ;;  %456 = vmatprep.mubr.f32.mxu1 %v4737_v3 }
  0x33   :  { %670 = vperm.xlu1 %2782, %v591_v56   ;;  %667 = vperm.xlu0 %2781, %v590_v57  }
  0x34   :  { %2743 = vmatmul.mubr.msk.f32.gmra.mrb[20].mxu0 %vm139_vm0, %v109_v58  ;;  %2759 = vmatmul.mubr.msk.f32.gmra.mrb[20].mxu1 %vm139_vm0, %v125_v59 }
  0x35   :  { %366 = vmatprep.mubr.f32.mxu0 %v4737_v3  ;;  %462 = vmatprep.mubr.f32.mxu1 %v4737_v3 }
  0x37   :  { %676 = vperm.xlu1 %2782, %v593_v60   ;;  %673 = vperm.xlu0 %2781, %v592_v61  }
  0x38   :  { %2744 = vmatmul.mubr.msk.f32.gmra.mrb[22].mxu0 %vm139_vm0, %v110_v62  ;;  %2760 = vmatmul.mubr.msk.f32.gmra.mrb[22].mxu1 %vm139_vm0, %v126_v63 }
  0x39   :  { %372 = vmatprep.mubr.f32.mxu0 %v4737_v3  ;;  %468 = vmatprep.mubr.f32.mxu1 %v4737_v3 }
  0x3b   :  { %682 = vperm.xlu1 %2782, %v595_v0   ;;  %679 = vperm.xlu0 %2781, %v594_v1  }
  0x3c   :  { %2745 = vmatmul.mubr.msk.f32.gmra.mrb[24].mxu0 %vm139_vm0, %v111_v2  ;;  %2761 = vmatmul.mubr.msk.f32.gmra.mrb[24].mxu1 %vm139_vm0, %v127_v4 }
  0x3d   :  { %378 = vmatprep.mubr.f32.mxu0 %v4737_v3  ;;  %474 = vmatprep.mubr.f32.mxu1 %v4737_v3 }
  0x3f   :  { %688 = vperm.xlu1 %2782, %v597_v5   ;;  %685 = vperm.xlu0 %2781, %v596_v6  }
  0x40   :  { %2746 = vmatmul.mubr.msk.f32.gmra.mrb[26].mxu0 %vm139_vm0, %v112_v7  ;;  %2762 = vmatmul.mubr.msk.f32.gmra.mrb[26].mxu1 %vm139_vm0, %v128_v8 }
  0x41   :  { %384 = vmatprep.mubr.f32.mxu0 %v4737_v3  ;;  %480 = vmatprep.mubr.f32.mxu1 %v4737_v3 }
  0x43   :  { %694 = vperm.xlu1 %2782, %v599_v9   ;;  %691 = vperm.xlu0 %2781, %v598_v10  }
  0x44   :  { %2747 = vmatmul.mubr.msk.f32.gmra.mrb[28].mxu0 %vm139_vm0, %v113_v11  ;;  %2763 = vmatmul.mubr.msk.f32.gmra.mrb[28].mxu1 %vm139_vm0, %v129_v12 }
  0x45   :  { %390 = vmatprep.mubr.f32.mxu0 %v4737_v3  ;;  %486 = vmatprep.mubr.f32.mxu1 %v4737_v3 }
  0x48   :  { %2748 = vmatmul.mubr.msk.f32.gmra.mrb[30].mxu0 %vm139_vm0, %v114_v13  ;;  %2764 = vmatmul.mubr.msk.f32.gmra.mrb[30].mxu1 %vm139_vm0, %v130_v14 }
  0x86   :  { %v3142_v15 = vpop.permute.xlu1 %607  ;;  %v3144_v16 = vpop.permute.xlu0 %601 }
  0x87   :  { %vm704_vm15 = vcmp.eq.s32.totalorder %v3144_v16, %v3161_v28  ;;  %vm705_vm0 = vcmp.eq.s32.totalorder %v3144_v16, %v3163_v29  ;;  %vm708_vm7 = vcmp.eq.s32.totalorder %v3142_v15, %v3161_v28  ;;  %vm709_vm4 = vcmp.eq.s32.totalorder %v3142_v15, %v3163_v29 }
  0x8a   :  { %v3146_v18 = vpop.permute.xlu1 %610  ;;  %v3148_v19 = vpop.permute.xlu0 %604 }
  0x8b   :  { %vm706_vm12 = vcmp.eq.s32.totalorder %v3148_v19, %v3161_v28  ;;  %vm707_vm11 = vcmp.eq.s32.totalorder %v3148_v19, %v3163_v29 }
  0x8e   :  { %v3150_v21 = vpop.permute.xlu1 %616  ;;  %v3152_v22 = vpop.permute.xlu0 %613 }
  0x92   :  { %v3157_v26 = vpop.permute.xlu1 %622  ;;  %v3159_v27 = vpop.permute.xlu0 %619 }
  0x96   :  { %v3165_v30 = vpop.permute.xlu1 %628  ;;  %v3167_v31 = vpop.permute.xlu0 %625 }
  0x97   :  { %vm722_vm1 = vcmp.eq.s32.totalorder %v3165_v30, %v3161_v28  ;;  %vm723_vm2 = vcmp.eq.s32.totalorder %v3165_v30, %v3163_v29 }
  0x9a   :  { %v3173_v32 = vpop.permute.xlu1 %634  ;;  %v3175_v33 = vpop.permute.xlu0 %631 }
  0x9b   :  { %vm724_vm5 = vcmp.eq.s32.totalorder %v3175_v33, %v3161_v28  ;;  %vm725_vm6 = vcmp.eq.s32.totalorder %v3175_v33, %v3163_v29 }
  0x9e   :  { %v3185_v34 = vpop.permute.xlu1 %640  ;;  %v3187_v35 = vpop.permute.xlu0 %637 }
  0xa2   :  { %v3197_v36 = vpop.permute.xlu1 %646  ;;  %v3199_v37 = vpop.permute.xlu0 %643 }
  0xa6   :  { %v650_v38 = vpop.permute.xlu0 %649  ;;  %v653_v40 = vpop.permute.xlu1 %652 }
  0xa7   :  { %vm738_vm14 = vcmp.eq.s32.totalorder %v653_v40, %v3161_v28  ;;  %vm739_vm13 = vcmp.eq.s32.totalorder %v653_v40, %v3163_v29  ;;  %vm736_vm8 = vcmp.eq.s32.totalorder %v650_v38, %v3161_v28  ;;  %vm737_vm10 = vcmp.eq.s32.totalorder %v650_v38, %v3163_v29 }
  0xaa   :  { %v3218_v43 = vpop.permute.xlu0 %655  ;;  %v3240_v52 = vpop.permute.xlu1 %658 }
  0xab   :  { %vm740_vm9 = vcmp.eq.s32.totalorder %v3218_v43, %v3161_v28  ;;  %vm741_vm3 = vcmp.eq.s32.totalorder %v3218_v43, %v3163_v29 }
  0xae   :  { %v3282_v10 = vpop.permute.xlu0 %661 }
  0xdf   :  { %v302_v44 = vpop.f32.mrb[0].mxu0  ;;  %v398_v45 = vpop.f32.mrb[0].mxu1 }
  0xe0   :  { %v504_v46 = vsub.f32 %v3212_v41, %v302_v44  ;;  %v536_v47 = vsub.f32 %v3212_v41, %v398_v45  ;;  %v304_v48 = vpop.f32.mrb[1].mxu0  ;;  %v400_v49 = vpop.f32.mrb[1].mxu1 }
  0xe1   :  { %v505_v50 = vsub.f32 %v3214_v42, %v304_v48  ;;  %v537_v51 = vsub.f32 %v3214_v42, %v400_v49 }
  0xe2   :  { %v1057_v53 = vsel %vm704_vm15, inf, %v504_v46  ;;  %v800_v54 = vsel %vm704_vm15, %v504_v46, -inf  ;;  %v832_v55 = vsel %vm736_vm8, %v536_v47, -inf  ;;  %v3254_v56 = vsel %vm736_vm8, inf, %v536_v47 }
  0xe3   :  { %v308_v57 = vpop.f32.mrb[2].mxu0  ;;  %v404_v58 = vpop.f32.mrb[2].mxu1  ;;  %v1058_v59 = vsel %vm705_vm0, inf, %v505_v50  ;;  %v801_v60 = vsel %vm705_vm0, %v505_v50, -inf  ;;  %v833_v61 = vsel %vm737_vm10, %v537_v51, -inf  ;;  %v3266_v62 = vsel %vm737_vm10, inf, %v537_v51 }
  0xe4   :  { %v506_v63 = vsub.f32 %v3212_v41, %v308_v57  ;;  %v538_v0 = vsub.f32 %v3212_v41, %v404_v58  ;;  %v310_v1 = vpop.f32.mrb[3].mxu0  ;;  %v406_v2 = vpop.f32.mrb[3].mxu1  ;;  %v1121_v4 = vmin.f32 %v1057_v53, %v1058_v59  ;;  %v864_v5 = vmax.f32 %v800_v54, %v801_v60 }
  0xe5   :  { %vm710_vm8 = vcmp.eq.s32.totalorder %v3146_v18, %v3161_v28  ;;  %vm742_vm15 = vcmp.eq.s32.totalorder %v3240_v52, %v3161_v28  ;;  %v507_v6 = vsub.f32 %v3214_v42, %v310_v1  ;;  %v539_v7 = vsub.f32 %v3214_v42, %v406_v2  ;;  %v3326_v50 = vpop.permute.xlu1 %664 }
  0xe6   :  { %v912_v8 = vmax.f32 %v832_v55, %v833_v61  ;;  %v1169_v9 = vmin.f32 %v3254_v56, %v3266_v62  ;;  %vm711_vm10 = vcmp.eq.s32.totalorder %v3146_v18, %v3163_v29  ;;  %vm743_vm0 = vcmp.eq.s32.totalorder %v3240_v52, %v3163_v29  ;;  %1122 = vmin.xlane.f32.xlu0 %v1121_v4 }
  0xe7   :  { %865 = vmax.xlane.f32.xlu1 %v864_v5  ;;  %v802_v11 = vsel %vm706_vm12, %v506_v63, -inf  ;;  %v834_v12 = vsel %vm738_vm14, %v538_v0, -inf  ;;  %v3292_v13 = vsel %vm706_vm12, inf, %v506_v63  ;;  %v3296_v14 = vsel %vm738_vm14, inf, %v538_v0  ;;  %v314_v16 = vpop.f32.mrb[4].mxu0  ;;  %v410_v17 = vpop.f32.mrb[4].mxu1 }
  0xe8   :  { %v803_v20 = vsel %vm707_vm11, %v507_v6, -inf  ;;  %v835_v23 = vsel %vm739_vm13, %v539_v7, -inf  ;;  %v3306_v24 = vsel %vm707_vm11, inf, %v507_v6  ;;  %v3310_v25 = vsel %vm739_vm13, inf, %v539_v7  ;;  %v316_v44 = vpop.f32.mrb[5].mxu0  ;;  %v412_v45 = vpop.f32.mrb[5].mxu1 }
  0xe9   :  { %v508_v38 = vsub.f32 %v3212_v41, %v314_v16  ;;  %v540_v39 = vsub.f32 %v3212_v41, %v410_v17  ;;  %v867_v46 = vmax.f32 %v802_v11, %v803_v20  ;;  %v915_v47 = vmax.f32 %v834_v12, %v835_v23  ;;  %v3390_v7 = vpop.permute.xlu0 %667 }
  0xea   :  { %vm712_vm12 = vcmp.eq.s32.totalorder %v3152_v22, %v3161_v28  ;;  %vm744_vm14 = vcmp.eq.s32.totalorder %v3282_v10, %v3161_v28  ;;  %v509_v19 = vsub.f32 %v3214_v42, %v316_v44  ;;  %v541_v40 = vsub.f32 %v3214_v42, %v412_v45 }
  0xeb   :  { %v1124_v48 = vmin.f32 %v3292_v13, %v3306_v24  ;;  %v1172_v49 = vmin.f32 %v3296_v14, %v3310_v25  ;;  %vm713_vm11 = vcmp.eq.s32.totalorder %v3152_v22, %v3163_v29  ;;  %vm745_vm13 = vcmp.eq.s32.totalorder %v3282_v10, %v3163_v29  ;;  %913 = vmax.xlane.f32.xlu1 %v912_v8  ;;  %v320_v56 = vpop.f32.mrb[6].mxu0  ;;  %v416_v57 = vpop.f32.mrb[6].mxu1 }
  0xec   :  { %868 = vmax.xlane.f32.xlu0 %v867_v46  ;;  %v3333_v51 = vsel %vm708_vm7, inf, %v508_v38  ;;  %v3338_v53 = vsel %vm708_vm7, %v508_v38, -inf  ;;  %v3343_v54 = vsel %vm740_vm9, %v540_v39, -inf  ;;  %v3348_v55 = vsel %vm740_vm9, inf, %v540_v39  ;;  %v322_v0 = vpop.f32.mrb[7].mxu0  ;;  %v418_v1 = vpop.f32.mrb[7].mxu1 }
  0xed   :  { %v3353_v58 = vsel %vm709_vm4, inf, %v509_v19  ;;  %v3358_v59 = vsel %vm709_vm4, %v509_v19, -inf  ;;  %v3363_v60 = vsel %vm741_vm3, %v541_v40, -inf  ;;  %v3368_v61 = vsel %vm741_vm3, inf, %v541_v40  ;;  %v3450_v19 = vpop.permute.xlu1 %670 }
  0xee   :  { %v510_v62 = vsub.f32 %v3212_v41, %v320_v56  ;;  %v542_v63 = vsub.f32 %v3212_v41, %v416_v57  ;;  %v1127_v15 = vmin.f32 %v3333_v51, %v3353_v58  ;;  %v870_v2 = vmax.f32 %v3338_v53, %v3358_v59 }
  0xef   :  { %vm714_vm4 = vcmp.eq.s32.totalorder %v3150_v21, %v3161_v28  ;;  %vm746_vm7 = vcmp.eq.s32.totalorder %v3326_v50, %v3161_v28  ;;  %v511_v43 = vsub.f32 %v3214_v42, %v322_v0  ;;  %v543_v4 = vsub.f32 %v3214_v42, %v418_v1  ;;  %1170 = vmin.xlane.f32.xlu1 %v1169_v9  ;;  %v326_v13 = vpop.f32.mrb[8].mxu0  ;;  %v422_v14 = vpop.f32.mrb[8].mxu1 }
  0xf0   :  { %v918_v5 = vmax.f32 %v3343_v54, %v3363_v60  ;;  %v1175_v6 = vmin.f32 %v3348_v55, %v3368_v61  ;;  %vm715_vm3 = vcmp.eq.s32.totalorder %v3150_v21, %v3163_v29  ;;  %vm747_vm9 = vcmp.eq.s32.totalorder %v3326_v50, %v3163_v29  ;;  %916 = vmax.xlane.f32.xlu0 %v915_v47  ;;  %v328_v38 = vpop.f32.mrb[9].mxu0  ;;  %v424_v39 = vpop.f32.mrb[9].mxu1 }
  0xf1   :  { %v3395_v8 = vsel %vm710_vm8, inf, %v510_v62  ;;  %v3400_v11 = vsel %vm710_vm8, %v510_v62, -inf  ;;  %v3405_v12 = vsel %vm742_vm15, %v542_v63, -inf  ;;  %v3410_v9 = vsel %vm742_vm15, inf, %v542_v63 }
  0xf2   :  { %v3415_v16 = vsel %vm711_vm10, inf, %v511_v43  ;;  %v3420_v17 = vsel %vm711_vm10, %v511_v43, -inf  ;;  %v3425_v20 = vsel %vm743_vm0, %v543_v4, -inf  ;;  %v3430_v23 = vsel %vm743_vm0, inf, %v543_v4 }
  0xf3   :  { %v512_v24 = vsub.f32 %v3212_v41, %v326_v13  ;;  %v544_v25 = vsub.f32 %v3212_v41, %v422_v14  ;;  %v1130_v18 = vmin.f32 %v3395_v8, %v3415_v16  ;;  %v873_v44 = vmax.f32 %v3400_v11, %v3420_v17  ;;  %1125 = vmin.xlane.f32.xlu1 %v1124_v48  ;;  %v428_v62 = vpop.f32.mrb[10].mxu1 }
  0xf4   :  { %vm716_vm8 = vcmp.eq.s32.totalorder %v3159_v27, %v3161_v28  ;;  %vm748_vm15 = vcmp.eq.s32.totalorder %v3390_v7, %v3161_v28  ;;  %v513_v52 = vsub.f32 %v3214_v42, %v328_v38  ;;  %v545_v45 = vsub.f32 %v3214_v42, %v424_v39  ;;  %1173 = vmin.xlane.f32.xlu0 %v1172_v49  ;;  %v332_v49 = vpop.f32.mrb[10].mxu0 }
  0xf5   :  { %v921_v46 = vmax.f32 %v3405_v12, %v3425_v20  ;;  %vm717_vm10 = vcmp.eq.s32.totalorder %v3159_v27, %v3163_v29  ;;  %vm749_vm0 = vcmp.eq.s32.totalorder %v3390_v7, %v3163_v29  ;;  %v3457_v40 = vsel %vm712_vm12, %v512_v24, -inf  ;;  %v334_v14 = vpop.f32.mrb[11].mxu0 }
  0xf6   :  { %v3462_v56 = vsel %vm744_vm14, %v544_v25, -inf  ;;  %v3467_v57 = vsel %vm712_vm12, inf, %v512_v24  ;;  %v3472_v48 = vsel %vm744_vm14, inf, %v544_v25  ;;  %v3477_v63 = vsel %vm713_vm11, %v513_v52, -inf  ;;  %v430_v24 = vpop.f32.mrb[11].mxu1 }
  0xf7   :  { %v3482_v0 = vsel %vm745_vm13, %v545_v45, -inf  ;;  %v3487_v1 = vsel %vm713_vm11, inf, %v513_v52  ;;  %v3492_v43 = vsel %vm745_vm13, inf, %v545_v45  ;;  %v514_v4 = vsub.f32 %v3212_v41, %v332_v49  ;;  %v3514_v45 = vpop.permute.xlu0 %673  ;;  %871 = vmax.xlane.f32.xlu1 %v870_v2  ;;  %v338_v53 = vpop.f32.mrb[12].mxu0 }
  0xf8   :  { %v546_v13 = vsub.f32 %v3212_v41, %v428_v62  ;;  %vm718_vm12 = vcmp.eq.s32.totalorder %v3157_v26, %v3161_v28  ;;  %vm750_vm14 = vcmp.eq.s32.totalorder %v3450_v19, %v3161_v28  ;;  %v515_v22 = vsub.f32 %v3214_v42, %v334_v14  ;;  %1128 = vmin.xlane.f32.xlu0 %v1127_v15  ;;  %v434_v58 = vpop.f32.mrb[12].mxu1  ;;  %v340_v3 = vpop.f32.mrb[13].mxu0 }
  0xf9   :  { %v547_v10 = vsub.f32 %v3214_v42, %v430_v24  ;;  %vm719_vm11 = vcmp.eq.s32.totalorder %v3157_v26, %v3163_v29  ;;  %vm751_vm13 = vcmp.eq.s32.totalorder %v3450_v19, %v3163_v29  ;;  %v3525_v49 = vsel %vm714_vm4, %v514_v4, -inf  ;;  %v436_v52 = vpop.f32.mrb[13].mxu1 }
  0xfa   :  { %v3530_v62 = vsel %vm746_vm7, %v546_v13, -inf  ;;  %v3535_v14 = vsel %vm714_vm4, inf, %v514_v4  ;;  %v3540_v51 = vsel %vm746_vm7, inf, %v546_v13  ;;  %v3545_v59 = vsel %vm715_vm3, %v515_v22, -inf }
  0xfb   :  { %v3550_v15 = vsel %vm747_vm9, %v547_v10, -inf  ;;  %v3555_v2 = vsel %vm715_vm3, inf, %v515_v22  ;;  %v3560_v4 = vsel %vm747_vm9, inf, %v547_v10  ;;  %v516_v13 = vsub.f32 %v3212_v41, %v338_v53  ;;  %v3580_v53 = vpop.permute.xlu1 %676  ;;  %919 = vmax.xlane.f32.xlu1 %v918_v5  ;;  %v344_v60 = vpop.f32.mrb[14].mxu0 }
  0xfc   :  { %v548_v24 = vsub.f32 %v3212_v41, %v434_v58  ;;  %vm720_vm4 = vcmp.eq.s32.totalorder %v3167_v31, %v3161_v28  ;;  %vm752_vm7 = vcmp.eq.s32.totalorder %v3514_v45, %v3161_v28  ;;  %v517_v21 = vsub.f32 %v3214_v42, %v340_v3  ;;  %1131 = vmin.xlane.f32.xlu0 %v1130_v18  ;;  %v440_v5 = vpop.f32.mrb[14].mxu1  ;;  %v346_v22 = vpop.f32.mrb[15].mxu0 }
  0xfd   :  { %v549_v50 = vsub.f32 %v3214_v42, %v436_v52  ;;  %vm721_vm3 = vcmp.eq.s32.totalorder %v3167_v31, %v3163_v29  ;;  %vm753_vm9 = vcmp.eq.s32.totalorder %v3514_v45, %v3163_v29  ;;  %v3593_v3 = vsel %vm716_vm8, %v516_v13, -inf  ;;  %v442_v38 = vpop.f32.mrb[15].mxu1 }
  0xfe   :  { %v3598_v52 = vsel %vm748_vm15, %v548_v24, -inf  ;;  %v3603_v58 = vsel %vm716_vm8, inf, %v516_v13  ;;  %v3608_v54 = vsel %vm748_vm15, inf, %v548_v24  ;;  %v3613_v8 = vsel %vm717_vm10, %v517_v21, -inf }
  0xff   :  { %v3618_v16 = vsel %vm749_vm0, %v549_v50, -inf  ;;  %v3623_v18 = vsel %vm717_vm10, inf, %v517_v21  ;;  %v3628_v13 = vsel %vm749_vm0, inf, %v549_v50  ;;  %v518_v24 = vsub.f32 %v3212_v41, %v344_v60  ;;  %v3646_v60 = vpop.permute.xlu0 %679  ;;  %1176 = vmin.xlane.f32.xlu1 %v1175_v6  ;;  %v350_v61 = vpop.f32.mrb[16].mxu0 }
 0x100   :  { %v550_v10 = vsub.f32 %v3212_v41, %v440_v5  ;;  %vm754_vm8 = vcmp.eq.s32.totalorder %v3580_v53, %v3161_v28  ;;  %v519_v27 = vsub.f32 %v3214_v42, %v346_v22  ;;  %v551_v7 = vsub.f32 %v3214_v42, %v442_v38  ;;  %874 = vmax.xlane.f32.xlu0 %v873_v44  ;;  %v446_v6 = vpop.f32.mrb[16].mxu1  ;;  %v352_v21 = vpop.f32.mrb[17].mxu0 }
 0x101   :  { %vm755_vm15 = vcmp.eq.s32.totalorder %v3580_v53, %v3163_v29  ;;  %v3657_v38 = vsel %vm718_vm12, %v518_v24, -inf  ;;  %v3667_v5 = vsel %vm718_vm12, inf, %v518_v24  ;;  %v520_v24 = vsub.f32 %v3212_v41, %v350_v61  ;;  %v448_v47 = vpop.f32.mrb[17].mxu1  ;;  %v3708_v61 = vpop.permute.xlu1 %682 }
 0x102   :  { %v3662_v22 = vsel %vm750_vm14, %v550_v10, -inf  ;;  %v3672_v55 = vsel %vm750_vm14, inf, %v550_v10  ;;  %v3677_v11 = vsel %vm719_vm11, %v519_v27, -inf  ;;  %v3682_v17 = vsel %vm751_vm13, %v551_v7, -inf }
 0x103   :  { %4757 = vst [vmem:[#allocation4_spill] sm:$0xff] %v3672_v55  ;;  %v3687_v44 = vsel %vm719_vm11, inf, %v519_v27  ;;  %v3692_v10 = vsel %vm751_vm13, inf, %v551_v7  ;;  %v552_v50 = vsub.f32 %v3212_v41, %v446_v6  ;;  %vm756_vm10 = vcmp.eq.s32.totalorder %v3646_v60, %v3161_v28  ;;  %v356_v20 = vpop.f32.mrb[18].mxu0 }
 0x104   :  { %4758 = vst [vmem:[#allocation5_spill] sm:$0xff] %v3692_v10  ;;  %v521_v26 = vsub.f32 %v3214_v42, %v352_v21  ;;  %v553_v19 = vsub.f32 %v3214_v42, %v448_v47  ;;  %vm757_vm0 = vcmp.eq.s32.totalorder %v3646_v60, %v3163_v29  ;;  %922 = vmax.xlane.f32.xlu0 %v921_v46  ;;  %v3721_v47 = vsel %vm720_vm4, %v520_v24, -inf  ;;  %v452_v46 = vpop.f32.mrb[18].mxu1  ;;  %v358_v25 = vpop.f32.mrb[19].mxu0 }
 0x105   :  { %v4759_v21 = vmax.f32 %v3457_v40, %v3477_v63  ;;  %v3726_v6 = vsel %vm752_vm7, %v552_v50, -inf  ;;  %v3731_v7 = vsel %vm720_vm4, inf, %v520_v24  ;;  %v3736_v12 = vsel %vm752_vm7, inf, %v552_v50  ;;  %v454_v39 = vpop.f32.mrb[19].mxu1 }
 0x106   :  { %4760 = vst [vmem:[#allocation6_spill] sm:$0xff] %v3736_v12  ;;  %v3741_v40 = vsel %vm721_vm3, %v521_v26, -inf  ;;  %v3746_v63 = vsel %vm753_vm9, %v553_v19, -inf  ;;  %v3751_v24 = vsel %vm721_vm3, inf, %v521_v26  ;;  %v3756_v50 = vsel %vm753_vm9, inf, %v553_v19 }
 0x107   :  { %877 = vmax.xlane.f32.xlu1 %v4759_v21  ;;  %4761 = vst [vmem:[#allocation7_spill] sm:$0xff] %v3751_v24  ;;  %4762 = vst [vmem:[#allocation8_spill] sm:$0xff] %v3756_v50  ;;  %v522_v21 = vsub.f32 %v3212_v41, %v356_v20  ;;  %v554_v27 = vsub.f32 %v3212_v41, %v452_v46  ;;  %vm758_vm12 = vcmp.eq.s32.totalorder %v3708_v61, %v3161_v28  ;;  %v3774_v20 = vpop.permute.xlu0 %685 }
 0x108   :  { %v523_v31 = vsub.f32 %v3214_v42, %v358_v25  ;;  %v555_v45 = vsub.f32 %v3214_v42, %v454_v39  ;;  %vm759_vm14 = vcmp.eq.s32.totalorder %v3708_v61, %v3163_v29  ;;  %v4763_v46 = vmin.f32 %v3410_v9, %v3430_v23  ;;  %v362_v23 = vpop.f32.mrb[20].mxu0 }
 0x109   :  { %v4764_v25 = vmax.f32 %v3462_v56, %v3482_v0  ;;  %v3785_v39 = vsel %vm722_vm1, %v522_v21, -inf  ;;  %v3790_v19 = vsel %vm754_vm8, %v554_v27, -inf  ;;  %v3795_v26 = vsel %vm722_vm1, inf, %v522_v21  ;;  %v458_v56 = vpop.f32.mrb[20].mxu1  ;;  %v364_v10 = vpop.f32.mrb[21].mxu0 }
 0x10a   :  { %1179 = vmin.xlane.f32.xlu0 %v4763_v46  ;;  %v3800_v9 = vsel %vm754_vm8, inf, %v554_v27  ;;  %v3805_v0 = vsel %vm723_vm2, %v523_v31, -inf  ;;  %v3810_v46 = vsel %vm755_vm15, %v555_v45, -inf  ;;  %v3815_v21 = vsel %vm723_vm2, inf, %v523_v31  ;;  %v460_v50 = vpop.f32.mrb[21].mxu1 }
 0x10b   :  { %925 = vmax.xlane.f32.xlu1 %v4764_v25  ;;  %4765 = vst [vmem:[#allocation9_spill] sm:$0xff] %v3800_v9  ;;  %4766 = vst [vmem:[#allocation10_spill] sm:$0xff] %v3815_v21  ;;  %v3820_v27 = vsel %vm755_vm15, inf, %v555_v45  ;;  %v524_v25 = vsub.f32 %v3212_v41, %v362_v23  ;;  %v556_v55 = vsub.f32 %v3212_v41, %v458_v56  ;;  %v3836_v23 = vpop.permute.xlu1 %688 }
 0x10c   :  { %4767 = vst [vmem:[#allocation11_spill] sm:$0xff] %v3820_v27  ;;  %vm760_vm1 = vcmp.eq.s32.totalorder %v3774_v20, %v3161_v28  ;;  %v525_v30 = vsub.f32 %v3214_v42, %v364_v10  ;;  %v557_v53 = vsub.f32 %v3214_v42, %v460_v50  ;;  %vm761_vm2 = vcmp.eq.s32.totalorder %v3774_v20, %v3163_v29 }
 0x10d   :  { %v4768_v56 = vmin.f32 %v3467_v57, %v3487_v1  ;;  %v4769_v10 = vmax.f32 %v3525_v49, %v3545_v59  ;;  %v3849_v50 = vsel %vm724_vm5, %v524_v25, -inf  ;;  %v3854_v45 = vsel %vm756_vm10, %v556_v55, -inf  ;;  %v368_v1 = vpop.f32.mrb[22].mxu0  ;;  %v464_v49 = vpop.f32.mrb[22].mxu1 }
 0x10e   :  { %v3859_v31 = vsel %vm724_vm5, inf, %v524_v25  ;;  %v3864_v57 = vsel %vm756_vm10, inf, %v556_v55  ;;  %v3869_v59 = vsel %vm725_vm6, %v525_v30, -inf  ;;  %v3879_v25 = vsel %vm725_vm6, inf, %v525_v30  ;;  %v370_v12 = vpop.f32.mrb[23].mxu0  ;;  %v466_v27 = vpop.f32.mrb[23].mxu1 }
 0x10f   :  { %1134 = vmin.xlane.f32.xlu1 %v4768_v56  ;;  %880 = vmax.xlane.f32.xlu0 %v4769_v10  ;;  %4770 = vst [vmem:[#allocation12_spill] sm:$0xff] %v3864_v57  ;;  %v3874_v56 = vsel %vm757_vm0, %v557_v53, -inf  ;;  %4771 = vst [vmem:[#allocation13_spill] sm:$0xff] %v3879_v25  ;;  %v3884_v55 = vsel %vm757_vm0, inf, %v557_v53  ;;  %v526_v10 = vsub.f32 %v3212_v41, %v368_v1  ;;  %v3902_v1 = vpop.permute.xlu0 %691 }
 0x110   :  { %4772 = vst [vmem:[#allocation14_spill] sm:$0xff] %v3884_v55  ;;  %v558_v24 = vsub.f32 %v3212_v41, %v464_v49  ;;  %vm762_vm5 = vcmp.eq.s32.totalorder %v3836_v23, %v3161_v28  ;;  %v527_v33 = vsub.f32 %v3214_v42, %v370_v12  ;;  %v559_v60 = vsub.f32 %v3214_v42, %v466_v27 }
 0x111   :  { %vm763_vm6 = vcmp.eq.s32.totalorder %v3836_v23, %v3163_v29  ;;  %v4773_v49 = vmin.f32 %v3472_v48, %v3492_v43  ;;  %v4774_v12 = vmax.f32 %v3530_v62, %v3550_v15  ;;  %vm4775_vm11 = vcmp.eq.s32.totalorder %v3173_v32, %v3161_v28  ;;  %v374_v43 = vpop.f32.mrb[24].mxu0  ;;  %v470_v62 = vpop.f32.mrb[24].mxu1 }
 0x112   :  { %v3913_v27 = vsel %vm4775_vm11, %v526_v10, -inf  ;;  %v3918_v53 = vsel %vm758_vm12, %v558_v24, -inf  ;;  %vm4776_vm13 = vmmov %vm4775_vm11  ;;  %v3928_v48 = vsel %vm758_vm12, inf, %v558_v24  ;;  %vm4778_vm4 = vcmp.eq.s32.totalorder %v3173_v32, %v3163_v29  ;;  %v376_v9 = vpop.f32.mrb[25].mxu0  ;;  %v472_v55 = vpop.f32.mrb[25].mxu1 }
 0x113   :  { %1182 = vmin.xlane.f32.xlu1 %v4773_v49  ;;  %928 = vmax.xlane.f32.xlu0 %v4774_v12  ;;  %v3923_v30 = vsel %vm4776_vm13, inf, %v526_v10  ;;  %4777 = vst [vmem:[#allocation15_spill] sm:$0xff] %v3928_v48  ;;  %v3933_v15 = vsel %vm4778_vm4, %v527_v33, -inf  ;;  %v3938_v49 = vsel %vm759_vm14, %v559_v60, -inf  ;;  %vm4779_vm7 = vmmov %vm4778_vm4  ;;  %v3948_v24 = vsel %vm759_vm14, inf, %v559_v60 }
 0x114   :  { %v3943_v10 = vsel %vm4779_vm7, inf, %v527_v33  ;;  %4781 = vst [vmem:[#allocation17_spill] sm:$0xff] %v3948_v24  ;;  %v528_v12 = vsub.f32 %v3212_v41, %v374_v43  ;;  %v560_v21 = vsub.f32 %v3212_v41, %v470_v62  ;;  %vm764_vm3 = vcmp.eq.s32.totalorder %v3902_v1, %v3161_v28  ;;  %v3964_v43 = vpop.permute.xlu1 %694 }
 0x115   :  { %4780 = vst [vmem:[#allocation16_spill] sm:$0xff] %v3943_v10  ;;  %v529_v32 = vsub.f32 %v3214_v42, %v376_v9  ;;  %v561_v61 = vsub.f32 %v3214_v42, %v472_v55  ;;  %vm765_vm9 = vcmp.eq.s32.totalorder %v3902_v1, %v3163_v29  ;;  %v4782_v62 = vmin.f32 %v3535_v14, %v3555_v2  ;;  %v380_v2 = vpop.f32.mrb[26].mxu0 }
 0x116   :  { %v4783_v9 = vmax.f32 %v3593_v3, %v3613_v8  ;;  %vm4784_vm8 = vcmp.eq.s32.totalorder %v3187_v35, %v3161_v28  ;;  %v3982_v60 = vsel %vm760_vm1, %v560_v21, -inf  ;;  %v3992_v14 = vsel %vm760_vm1, inf, %v560_v21  ;;  %v476_v3 = vpop.f32.mrb[26].mxu1  ;;  %v382_v57 = vpop.f32.mrb[27].mxu0 }
 0x117   :  { %1137 = vmin.xlane.f32.xlu0 %v4782_v62  ;;  %v3977_v55 = vsel %vm4784_vm8, %v528_v12, -inf  ;;  %vm4785_vm15 = vmmov %vm4784_vm8  ;;  %4786 = vst [vmem:[#allocation18_spill] sm:$0xff] %v3992_v14  ;;  %vm4787_vm10 = vcmp.eq.s32.totalorder %v3187_v35, %v3163_v29  ;;  %v4002_v62 = vsel %vm761_vm2, %v561_v61, -inf  ;;  %v4012_v21 = vsel %vm761_vm2, inf, %v561_v61  ;;  %v478_v24 = vpop.f32.mrb[27].mxu1 }
 0x118   :  { %883 = vmax.xlane.f32.xlu1 %v4783_v9  ;;  %v3987_v33 = vsel %vm4785_vm15, inf, %v528_v12  ;;  %v3997_v8 = vsel %vm4787_vm10, %v529_v32, -inf  ;;  %vm4788_vm0 = vmmov %vm4787_vm10  ;;  %4789 = vst [vmem:[#allocation19_spill] sm:$0xff] %v4012_v21  ;;  %v530_v9 = vsub.f32 %v3212_v41, %v380_v2  ;;  %v562_v25 = vsub.f32 %v3212_v41, %v476_v3 }
 0x119   :  { %v4007_v12 = vsel %vm4788_vm0, inf, %v529_v32  ;;  %vm766_vm12 = vcmp.eq.s32.totalorder %v3964_v43, %v3161_v28  ;;  %v531_v35 = vsub.f32 %v3214_v42, %v382_v57  ;;  %v563_v20 = vsub.f32 %v3214_v42, %v478_v24 }
 0x11a   :  { %vm767_vm14 = vcmp.eq.s32.totalorder %v3964_v43, %v3163_v29  ;;  %v4790_v2 = vmin.f32 %v3540_v51, %v3560_v4  ;;  %v4791_v3 = vmax.f32 %v3598_v52, %v3618_v16  ;;  %vm4792_vm1 = vcmp.eq.s32.totalorder %v3185_v34, %v3161_v28  ;;  %v386_v4 = vpop.f32.mrb[28].mxu0  ;;  %v482_v52 = vpop.f32.mrb[28].mxu1 }
 0x11b   :  { %v4039_v57 = vsel %vm4792_vm1, %v530_v9, -inf  ;;  %v4044_v24 = vsel %vm762_vm5, %v562_v25, -inf  ;;  %vm4793_vm2 = vmmov %vm4792_vm1  ;;  %v4054_v51 = vsel %vm762_vm5, inf, %v562_v25  ;;  %vm4795_vm11 = vcmp.eq.s32.totalorder %v3185_v34, %v3163_v29  ;;  %v388_v10 = vpop.f32.mrb[29].mxu0  ;;  %v484_v48 = vpop.f32.mrb[29].mxu1 }
 0x11c   :  { %1185 = vmin.xlane.f32.xlu0 %v4790_v2  ;;  %931 = vmax.xlane.f32.xlu1 %v4791_v3  ;;  %v4049_v61 = vsel %vm4793_vm2, inf, %v530_v9  ;;  %4794 = vst [vmem:[#allocation20_spill] sm:$0xff] %v4054_v51  ;;  %v4059_v16 = vsel %vm4795_vm11, %v531_v35, -inf  ;;  %v4064_v2 = vsel %vm763_vm6, %v563_v20, -inf  ;;  %vm4796_vm13 = vmmov %vm4795_vm11  ;;  %v4074_v25 = vsel %vm763_vm6, inf, %v563_v20 }
 0x11d   :  { %v4069_v9 = vsel %vm4796_vm13, inf, %v531_v35  ;;  %4797 = vst [vmem:[#allocation21_spill] sm:$0xff] %v4074_v25  ;;  %v532_v3 = vsub.f32 %v3212_v41, %v386_v4  ;;  %v564_v32 = vsub.f32 %v3212_v41, %v482_v52  ;;  %v533_v34 = vsub.f32 %v3214_v42, %v388_v10 }
 0x11e   :  { %v565_v35 = vsub.f32 %v3214_v42, %v484_v48  ;;  %v4798_v4 = vmin.f32 %v3603_v58, %v3623_v18  ;;  %v4799_v52 = vmax.f32 %v3657_v38, %v3677_v11  ;;  %vm4800_vm5 = vcmp.eq.s32.totalorder %v3199_v37, %v3161_v28  ;;  %v392_v18 = vpop.f32.mrb[30].mxu0  ;;  %v488_v38 = vpop.f32.mrb[30].mxu1 }
 0x11f   :  { %v4097_v10 = vsel %vm4800_vm5, %v532_v3, -inf  ;;  %v4102_v48 = vsel %vm764_vm3, %v564_v32, -inf  ;;  %vm4801_vm6 = vmmov %vm4800_vm5  ;;  %v4112_v58 = vsel %vm764_vm3, inf, %v564_v32  ;;  %vm4802_vm4 = vcmp.eq.s32.totalorder %v3199_v37, %v3163_v29  ;;  %v394_v14 = vpop.f32.mrb[31].mxu0  ;;  %v490_v21 = vpop.f32.mrb[31].mxu1 }
 0x120   :  { %1140 = vmin.xlane.f32.xlu1 %v4798_v4  ;;  %886 = vmax.xlane.f32.xlu0 %v4799_v52  ;;  %v4107_v20 = vsel %vm4801_vm6, inf, %v532_v3  ;;  %v4117_v11 = vsel %vm4802_vm4, %v533_v34, -inf  ;;  %v4122_v4 = vsel %vm765_vm9, %v565_v35, -inf  ;;  %vm4803_vm7 = vmmov %vm4802_vm4  ;;  %v4132_v32 = vsel %vm765_vm9, inf, %v565_v35 }
 0x121   :  { %v4127_v3 = vsel %vm4803_vm7, inf, %v533_v34  ;;  %v534_v52 = vsub.f32 %v3212_v41, %v392_v18  ;;  %v566_v23 = vsub.f32 %v3212_v41, %v488_v38  ;;  %v906_v25 = vmax.f32 %v4097_v10, %v4117_v11 }
 0x122   :  { %v954_v51 = vmax.f32 %v4102_v48, %v4122_v4  ;;  %v535_v37 = vsub.f32 %v3214_v42, %v394_v14  ;;  %v567_v34 = vsub.f32 %v3214_v42, %v490_v21  ;;  %v1163_v1 = vmin.f32 %v4107_v20, %v4127_v3 }
 0x123   :  { %v1211_v35 = vmin.f32 %v4112_v58, %v4132_v32  ;;  %v4804_v41 = vmin.f32 %v3608_v54, %v3628_v13  ;;  %v4805_v18 = vmax.f32 %v3662_v22, %v3682_v17  ;;  %vm4806_vm3 = vcmp.eq.s32.totalorder %v3197_v36, %v3161_v28  ;;  %v1284_v32 = vld [vmem:[%s4736_s2] sm:$0xff] }
 0x124   :  { %v4155_v14 = vsel %vm4806_vm3, %v534_v52, -inf  ;;  %v4160_v42 = vsel %vm766_vm12, %v566_v23, -inf  ;;  %vm4807_vm9 = vmmov %vm4806_vm3  ;;  %v4170_v54 = vsel %vm766_vm12, inf, %v566_v23  ;;  %vm4808_vm8 = vcmp.eq.s32.totalorder %v3197_v36, %v3163_v29 }
 0x125   :  { %1188 = vmin.xlane.f32.xlu1 %v4804_v41  ;;  %934 = vmax.xlane.f32.xlu0 %v4805_v18  ;;  %v4165_v21 = vsel %vm4807_vm9, inf, %v534_v52  ;;  %v4175_v13 = vsel %vm4808_vm8, %v535_v37, -inf  ;;  %v4180_v22 = vsel %vm767_vm14, %v567_v34, -inf  ;;  %vm4809_vm15 = vmmov %vm4808_vm8  ;;  %v4190_v28 = vsel %vm767_vm14, inf, %v567_v34  ;;  %v4817_v18 = vld [vmem:[#allocation7_spill] sm:$0xff] }
 0x126   :  { %v4185_v17 = vsel %vm4809_vm15, inf, %v535_v37  ;;  %v909_v23 = vmax.f32 %v4155_v14, %v4175_v13  ;;  %v957_v38 = vmax.f32 %v4160_v42, %v4180_v22  ;;  %vm27_vm10 = vcmask 7168  }
 0x127   :  { %v1166_v52 = vmin.f32 %v4165_v21, %v4185_v17  ;;  %v4810_v36 = vmin.f32 %v3667_v5, %v3687_v44  ;;  %v4811_v29 = vmax.f32 %v3721_v47, %v3741_v40  ;;  %v2825_v43 = vmov inf   ;;  %v4813_v47 = vld [vmem:[#allocation4_spill] sm:$0xff]  ;;  %v4814_v40 = vld [vmem:[#allocation5_spill] sm:$0xff] }
 0x128   :  { %60 = vst.msk [vmem:[#allocation3] sm:$0xff] %vm27_vm10, %v2825_v43  ;;  %61 = vst.msk [vmem:[#allocation3 + $0x8] sm:$0xff] %vm27_vm10, %v2825_v43  ;;  %v2826_v5 = vmov -inf   ;;  %v4812_v44 = vmov 0.0   ;;  %v4815_v37 = vmin.f32 %v4813_v47, %v4814_v40  ;;  %v4816_v34 = vmax.f32 %v3726_v6, %v3746_v63  ;;  %v4824_v47 = vld [vmem:[#allocation10_spill] sm:$0xff]  ;;  %v4827_v63 = vld [vmem:[#allocation9_spill] sm:$0xff] }
 0x129   :  { %1143 = vmin.xlane.f32.xlu0 %v4810_v36  ;;  %889 = vmax.xlane.f32.xlu1 %v4811_v29  ;;  %62 = vst.msk [vmem:[#allocation3 + $0x10] sm:$0xff] %vm27_vm10, %v2825_v43  ;;  %63 = vst.msk [vmem:[#allocation3 + $0x18] sm:$0xff] %vm27_vm10, %v2825_v43  ;;  %v4818_v36 = vmin.f32 %v3731_v7, %v4817_v18  ;;  %v4819_v29 = vmax.f32 %v3785_v39, %v3805_v0  ;;  %v4828_v40 = vld [vmem:[#allocation11_spill] sm:$0xff]  ;;  %v4842_v18 = vld [vmem:[#allocation17_spill] sm:$0xff] }
 0x12a   :  { %64 = vst.msk [vmem:[#allocation3 + $0x20] sm:$0xff] %vm27_vm10, %v2825_v43  ;;  %65 = vst.msk [vmem:[#allocation3 + $0x28] sm:$0xff] %vm27_vm10, %v2825_v43  ;;  %v4825_v6 = vmin.f32 %v3795_v26, %v4824_v47  ;;  %v4826_v7 = vmax.f32 %v3849_v50, %v3869_v59  ;;  %v4829_v39 = vmin.f32 %v4827_v63, %v4828_v40 }
 0x12b   :  { %66 = vst.msk [vmem:[#allocation3 + $0x30] sm:$0xff] %vm27_vm10, %v2825_v43  ;;  %67 = vst.msk [vmem:[#allocation3 + $0x38] sm:$0xff] %vm27_vm10, %v2825_v43  ;;  %v4830_v0 = vmax.f32 %v3854_v45, %v3874_v56  ;;  %v4833_v26 = vmax.f32 %v3913_v27, %v3933_v15  ;;  %v4837_v59 = vmax.f32 %v3918_v53, %v3938_v49  ;;  %v4841_v56 = vld [vmem:[#allocation15_spill] sm:$0xff]  ;;  %v4847_v49 = vld [vmem:[#allocation18_spill] sm:$0xff] }
 0x12c   :  { %68 = vst.msk [vmem:[#allocation3 + $0x40] sm:$0xff] %vm27_vm10, %v2825_v43  ;;  %69 = vst.msk [vmem:[#allocation3 + $0x48] sm:$0xff] %vm27_vm10, %v2825_v43  ;;  %v4843_v27 = vmin.f32 %v4841_v56, %v4842_v18  ;;  %v4844_v15 = vmax.f32 %v3982_v60, %v4002_v62  ;;  %v4845_v53 = vmin.f32 %v3987_v33, %v4007_v12  ;;  %v4852_v33 = vld [vmem:[#allocation20_spill] sm:$0xff]  ;;  %v4853_v62 = vld [vmem:[#allocation21_spill] sm:$0xff] }
 0x12d   :  { %70 = vst.msk [vmem:[#allocation3 + $0x50] sm:$0xff] %vm27_vm10, %v2825_v43  ;;  %71 = vst.msk [vmem:[#allocation3 + $0x58] sm:$0xff] %vm27_vm10, %v2825_v43  ;;  %1191 = vmin.xlane.f32.xlu0 %v4815_v37  ;;  %937 = vmax.xlane.f32.xlu1 %v4816_v34  ;;  %v4835_v37 = vld [vmem:[#allocation14_spill] sm:$0xff]  ;;  %v4838_v34 = vld [vmem:[#allocation16_spill] sm:$0xff]  ;;  %v4851_v60 = vmin.f32 %v4049_v61, %v4069_v9  ;;  %v4854_v12 = vmin.f32 %v4852_v33, %v4853_v62 }
 0x12e   :  { %72 = vst.msk [vmem:[#allocation3 + $0x60] sm:$0xff] %vm27_vm10, %v2825_v43  ;;  %73 = vst.msk [vmem:[#allocation3 + $0x68] sm:$0xff] %vm27_vm10, %v2825_v43  ;;  %v4839_v45 = vmin.f32 %v3923_v30, %v4838_v34  ;;  %v4846_v30 = vmax.f32 %v4039_v57, %v4059_v16  ;;  %v4855_v61 = vmin.f32 %v4170_v54, %v4190_v28 }
 0x12f   :  { %74 = vst.msk [vmem:[#allocation3 + $0x70] sm:$0xff] %vm27_vm10, %v2825_v43  ;;  %75 = vst.msk [vmem:[#allocation3 + $0x78] sm:$0xff] %vm27_vm10, %v2825_v43  ;;  %v1025_v57 = vld [vmem:[#allocation3] sm:$0xff]  ;;  %v1026_v21 = vld [vmem:[#allocation3 + $0x8] sm:$0xff] }
 0x130   :  { %76 = vst.msk [vmem:[#allocation3 + $0x80] sm:$0xff] %vm27_vm10, %v2825_v43  ;;  %77 = vst.msk [vmem:[#allocation3 + $0x88] sm:$0xff] %vm27_vm10, %v2825_v43  ;;  %v1027_v40 = vld [vmem:[#allocation3 + $0x10] sm:$0xff] }
 0x131   :  { %78 = vst.msk [vmem:[#allocation3 + $0x90] sm:$0xff] %vm27_vm10, %v2825_v43  ;;  %79 = vst.msk [vmem:[#allocation3 + $0x98] sm:$0xff] %vm27_vm10, %v2825_v43  ;;  %1146 = vmin.xlane.f32.xlu1 %v4818_v36  ;;  %892 = vmax.xlane.f32.xlu0 %v4819_v29  ;;  %v4848_v36 = vld [vmem:[#allocation19_spill] sm:$0xff] }
 0x132   :  { %80 = vst.msk [vmem:[#allocation3 + $0xa0] sm:$0xff] %vm27_vm10, %v2825_v43  ;;  %81 = vst.msk [vmem:[#allocation3 + $0xa8] sm:$0xff] %vm27_vm10, %v2825_v43 }
 0x133   :  { %82 = vst.msk [vmem:[#allocation3 + $0xb0] sm:$0xff] %vm27_vm10, %v2825_v43  ;;  %83 = vst.msk [vmem:[#allocation3 + $0xb8] sm:$0xff] %vm27_vm10, %v2825_v43 }
 0x134   :  { %84 = vst.msk [vmem:[#allocation3 + $0xc0] sm:$0xff] %vm27_vm10, %v2825_v43  ;;  %85 = vst.msk [vmem:[#allocation3 + $0xc8] sm:$0xff] %vm27_vm10, %v2825_v43 }
 0x135   :  { %86 = vst.msk [vmem:[#allocation3 + $0xd0] sm:$0xff] %vm27_vm10, %v2825_v43  ;;  %87 = vst.msk [vmem:[#allocation3 + $0xd8] sm:$0xff] %vm27_vm10, %v2825_v43 }
 0x136   :  { %88 = vst.msk [vmem:[#allocation3 + $0xe0] sm:$0xff] %vm27_vm10, %v2825_v43  ;;  %89 = vst.msk [vmem:[#allocation3 + $0xe8] sm:$0xff] %vm27_vm10, %v2825_v43 }
 0x137   :  { %90 = vst.msk [vmem:[#allocation3 + $0xf0] sm:$0xff] %vm27_vm10, %v2825_v43  ;;  %91 = vst.msk [vmem:[#allocation3 + $0xf8] sm:$0xff] %vm27_vm10, %v2825_v43  ;;  %v4820_v43 = vld [vmem:[#allocation6_spill] sm:$0xff]  ;;  %v1041_v4 = vld [vmem:[#allocation3 + $0x80] sm:$0xff] }
 0x138   :  { %28 = vst.msk [vmem:[#allocation2] sm:$0xff] %vm27_vm10, %v2826_v5  ;;  %2699 = vst.msk [vmem:[%s4735_s6 + $0x20] sm:$0xff] %vm27_vm10, %v4812_v44  ;;  %v1042_v22 = vld [vmem:[#allocation3 + $0x88] sm:$0xff] }
 0x139   :  { %2700 = vst.msk [vmem:[%s4735_s6 + $0x28] sm:$0xff] %vm27_vm10, %v4812_v44  ;;  %2701 = vst.msk [vmem:[%s4735_s6 + $0x30] sm:$0xff] %vm27_vm10, %v4812_v44 }
 0x13a   :  { %2702 = vst.msk [vmem:[%s4735_s6 + $0x38] sm:$0xff] %vm27_vm10, %v4812_v44  ;;  %2703 = vst.msk [vmem:[%s4735_s6 + $0x40] sm:$0xff] %vm27_vm10, %v4812_v44 }
 0x13b   :  { %2704 = vst.msk [vmem:[%s4735_s6 + $0x48] sm:$0xff] %vm27_vm10, %v4812_v44  ;;  %2705 = vst.msk [vmem:[%s4735_s6 + $0x50] sm:$0xff] %vm27_vm10, %v4812_v44 }
 0x13c   :  { %2706 = vst.msk [vmem:[%s4735_s6 + $0x58] sm:$0xff] %vm27_vm10, %v4812_v44  ;;  %2707 = vst.msk [vmem:[%s4735_s6 + $0x60] sm:$0xff] %vm27_vm10, %v4812_v44 }
 0x13d   :  { %2708 = vst.msk [vmem:[%s4735_s6 + $0x68] sm:$0xff] %vm27_vm10, %v4812_v44  ;;  %2709 = vst.msk [vmem:[%s4735_s6 + $0x70] sm:$0xff] %vm27_vm10, %v4812_v44 }
 0x13e   :  { %2710 = vst.msk [vmem:[%s4735_s6 + $0x78] sm:$0xff] %vm27_vm10, %v4812_v44  ;;  %2711 = vst.msk [vmem:[%s4735_s6 + $0x80] sm:$0xff] %vm27_vm10, %v4812_v44 }
 0x13f   :  { %2712 = vst.msk [vmem:[%s4735_s6 + $0x88] sm:$0xff] %vm27_vm10, %v4812_v44  ;;  %2713 = vst.msk [vmem:[%s4735_s6 + $0x90] sm:$0xff] %vm27_vm10, %v4812_v44 }
 0x140   :  { %2714 = vst.msk [vmem:[%s4735_s6 + $0x98] sm:$0xff] %vm27_vm10, %v4812_v44  ;;  %2715 = vst.msk [vmem:[%s4735_s6 + $0xa0] sm:$0xff] %vm27_vm10, %v4812_v44 }
 0x141   :  { %2716 = vst.msk [vmem:[%s4735_s6 + $0xa8] sm:$0xff] %vm27_vm10, %v4812_v44  ;;  %2717 = vst.msk [vmem:[%s4735_s6 + $0xb0] sm:$0xff] %vm27_vm10, %v4812_v44 }
 0x142   :  { %2718 = vst.msk [vmem:[%s4735_s6 + $0xb8] sm:$0xff] %vm27_vm10, %v4812_v44  ;;  %2719 = vst.msk [vmem:[%s4735_s6 + $0xc0] sm:$0xff] %vm27_vm10, %v4812_v44 }
 0x143   :  { %2720 = vst.msk [vmem:[%s4735_s6 + $0xc8] sm:$0xff] %vm27_vm10, %v4812_v44  ;;  %2721 = vst.msk [vmem:[%s4735_s6 + $0xd0] sm:$0xff] %vm27_vm10, %v4812_v44 }
 0x144   :  { %2722 = vst.msk [vmem:[%s4735_s6 + $0xd8] sm:$0xff] %vm27_vm10, %v4812_v44  ;;  %2723 = vst.msk [vmem:[%s4735_s6 + $0xe0] sm:$0xff] %vm27_vm10, %v4812_v44 }
 0x145   :  { %2724 = vst.msk [vmem:[%s4735_s6 + $0xe8] sm:$0xff] %vm27_vm10, %v4812_v44  ;;  %2725 = vst.msk [vmem:[%s4735_s6 + $0xf0] sm:$0xff] %vm27_vm10, %v4812_v44 }
 0x146   :  { %2726 = vst.msk [vmem:[%s4735_s6 + $0xf8] sm:$0xff] %vm27_vm10, %v4812_v44  ;;  %29 = vst.msk [vmem:[#allocation2 + $0x8] sm:$0xff] %vm27_vm10, %v2826_v5  ;;  %v4821_v44 = vld [vmem:[#allocation8_spill] sm:$0xff] }
 0x147   :  { %30 = vst.msk [vmem:[#allocation2 + $0x10] sm:$0xff] %vm27_vm10, %v2826_v5  ;;  %31 = vst.msk [vmem:[#allocation2 + $0x18] sm:$0xff] %vm27_vm10, %v2826_v5  ;;  %v4822_v41 = vmin.f32 %v4820_v43, %v4821_v44 }
 0x148   :  { %32 = vst.msk [vmem:[#allocation2 + $0x20] sm:$0xff] %vm27_vm10, %v2826_v5  ;;  %33 = vst.msk [vmem:[#allocation2 + $0x28] sm:$0xff] %vm27_vm10, %v2826_v5 }
 0x149   :  { %34 = vst.msk [vmem:[#allocation2 + $0x30] sm:$0xff] %vm27_vm10, %v2826_v5  ;;  %35 = vst.msk [vmem:[#allocation2 + $0x38] sm:$0xff] %vm27_vm10, %v2826_v5  ;;  %1194 = vmin.xlane.f32.xlu1 %v4822_v41  ;;  %v4831_v41 = vld [vmem:[#allocation13_spill] sm:$0xff] }
 0x14a   :  { %36 = vst.msk [vmem:[#allocation2 + $0x40] sm:$0xff] %vm27_vm10, %v2826_v5  ;;  %37 = vst.msk [vmem:[#allocation2 + $0x48] sm:$0xff] %vm27_vm10, %v2826_v5 }
 0x14b   :  { %38 = vst.msk [vmem:[#allocation2 + $0x50] sm:$0xff] %vm27_vm10, %v2826_v5  ;;  %39 = vst.msk [vmem:[#allocation2 + $0x58] sm:$0xff] %vm27_vm10, %v2826_v5 }
 0x14c   :  { %40 = vst.msk [vmem:[#allocation2 + $0x60] sm:$0xff] %vm27_vm10, %v2826_v5  ;;  %41 = vst.msk [vmem:[#allocation2 + $0x68] sm:$0xff] %vm27_vm10, %v2826_v5 }
 0x14d   :  { %42 = vst.msk [vmem:[#allocation2 + $0x70] sm:$0xff] %vm27_vm10, %v2826_v5  ;;  %43 = vst.msk [vmem:[#allocation2 + $0x78] sm:$0xff] %vm27_vm10, %v2826_v5  ;;  %895 = vmax.xlane.f32.xlu1 %v4826_v7  ;;  %v769_v20 = vld [vmem:[#allocation2 + $0x8] sm:$0xff] }
 0x14e   :  { %44 = vst.msk [vmem:[#allocation2 + $0x80] sm:$0xff] %vm27_vm10, %v2826_v5  ;;  %45 = vst.msk [vmem:[#allocation2 + $0x88] sm:$0xff] %vm27_vm10, %v2826_v5 }
 0x14f   :  { %46 = vst.msk [vmem:[#allocation2 + $0x90] sm:$0xff] %vm27_vm10, %v2826_v5  ;;  %47 = vst.msk [vmem:[#allocation2 + $0x98] sm:$0xff] %vm27_vm10, %v2826_v5 }
 0x150   :  { %48 = vst.msk [vmem:[#allocation2 + $0xa0] sm:$0xff] %vm27_vm10, %v2826_v5  ;;  %49 = vst.msk [vmem:[#allocation2 + $0xa8] sm:$0xff] %vm27_vm10, %v2826_v5 }
 0x151   :  { %50 = vst.msk [vmem:[#allocation2 + $0xb0] sm:$0xff] %vm27_vm10, %v2826_v5  ;;  %51 = vst.msk [vmem:[#allocation2 + $0xb8] sm:$0xff] %vm27_vm10, %v2826_v5  ;;  %943 = vmax.xlane.f32.xlu1 %v4830_v0 }
 0x152   :  { %52 = vst.msk [vmem:[#allocation2 + $0xc0] sm:$0xff] %vm27_vm10, %v2826_v5  ;;  %53 = vst.msk [vmem:[#allocation2 + $0xc8] sm:$0xff] %vm27_vm10, %v2826_v5 }
 0x153   :  { %54 = vst.msk [vmem:[#allocation2 + $0xd0] sm:$0xff] %vm27_vm10, %v2826_v5  ;;  %55 = vst.msk [vmem:[#allocation2 + $0xd8] sm:$0xff] %vm27_vm10, %v2826_v5 }
 0x154   :  { %56 = vst.msk [vmem:[#allocation2 + $0xe0] sm:$0xff] %vm27_vm10, %v2826_v5  ;;  %57 = vst.msk [vmem:[#allocation2 + $0xe8] sm:$0xff] %vm27_vm10, %v2826_v5 }
 0x155   :  { %58 = vst.msk [vmem:[#allocation2 + $0xf0] sm:$0xff] %vm27_vm10, %v2826_v5  ;;  %59 = vst.msk [vmem:[#allocation2 + $0xf8] sm:$0xff] %vm27_vm10, %v2826_v5  ;;  %v4823_v5 = vmax.f32 %v3790_v19, %v3810_v46  ;;  %v4832_v19 = vmin.f32 %v3859_v31, %v4831_v41  ;;  %v4834_v46 = vld [vmem:[#allocation12_spill] sm:$0xff]  ;;  %v4840_v31 = vmax.f32 %v3977_v55, %v3997_v8  ;;  %v785_v3 = vld [vmem:[#allocation2 + $0x88] sm:$0xff] }
 0x156   :  { %v4836_v50 = vmin.f32 %v4834_v46, %v4835_v37  ;;  %v4849_v55 = vmin.f32 %v4847_v49, %v4848_v36  ;;  %v4850_v8 = vmax.f32 %v4044_v24, %v4064_v2  ;;  %v768_v24 = vld [vmem:[#allocation2] sm:$0xff]  ;;  %v787_v62 = vld [vmem:[#allocation2 + $0x98] sm:$0xff] }
 0x157   :  { %940 = vmax.xlane.f32.xlu0 %v4823_v5  ;;  %1152 = vmin.xlane.f32.xlu1 %v4832_v19 }
 0x15b   :  { %1149 = vmin.xlane.f32.xlu0 %v4825_v6  ;;  %1200 = vmin.xlane.f32.xlu1 %v4836_v50  ;;  %v786_v50 = vld [vmem:[#allocation2 + $0x90] sm:$0xff] }
 0x15f   :  { %1197 = vmin.xlane.f32.xlu0 %v4829_v39  ;;  %901 = vmax.xlane.f32.xlu1 %v4840_v31  ;;  %v770_v39 = vld [vmem:[#allocation2 + $0x10] sm:$0xff] }
 0x163   :  { %898 = vmax.xlane.f32.xlu0 %v4833_v26  ;;  %949 = vmax.xlane.f32.xlu1 %v4844_v15  ;;  %v1043_v15 = vld [vmem:[#allocation3 + $0x90] sm:$0xff] }
 0x167   :  { %946 = vmax.xlane.f32.xlu0 %v4837_v59  ;;  %1158 = vmin.xlane.f32.xlu1 %v4845_v53  ;;  %v1028_v59 = vld [vmem:[#allocation3 + $0x18] sm:$0xff] }
 0x168   :  { %v771_v53 = vld [vmem:[#allocation2 + $0x18] sm:$0xff] }
 0x16b   :  { %1155 = vmin.xlane.f32.xlu0 %v4839_v45  ;;  %1206 = vmin.xlane.f32.xlu1 %v4849_v55 }
 0x16f   :  { %1203 = vmin.xlane.f32.xlu0 %v4843_v27  ;;  %907 = vmax.xlane.f32.xlu1 %v906_v25  ;;  %v784_v25 = vld [vmem:[#allocation2 + $0x80] sm:$0xff] }
 0x173   :  { %904 = vmax.xlane.f32.xlu0 %v4846_v30  ;;  %955 = vmax.xlane.f32.xlu1 %v954_v51  ;;  %v1123_v51 = vpop.xlane.xlu0 %1122 }
 0x174   :  { %v866_v16 = vpop.xlane.xlu1 %865  ;;  %v1217_v2 = vmin.f32 %v1025_v57, %v1123_v51 }
 0x175   :  { %v960_v9 = vmax.f32 %v768_v24, %v866_v16 }
 0x176   :  { %1249 = vst.msk [vmem:[#allocation3] sm:$0xff] %vm27_vm10, %v1217_v2 }
 0x177   :  { %952 = vmax.xlane.f32.xlu0 %v4850_v8  ;;  %1164 = vmin.xlane.f32.xlu1 %v1163_v1  ;;  %993 = vst.msk [vmem:[#allocation2] sm:$0xff] %vm27_vm10, %v960_v9  ;;  %v1286_v8 = vld [vmem:[%s4736_s2 + $0x10] sm:$0xff] }
 0x178   :  { %v914_v10 = vpop.xlane.xlu1 %913 }
 0x179   :  { %v869_v48 = vpop.xlane.xlu0 %868  ;;  %v976_v58 = vmax.f32 %v784_v25, %v914_v10 }
 0x17a   :  { %v961_v11 = vmax.f32 %v769_v20, %v869_v48 }
 0x17b   :  { %1161 = vmin.xlane.f32.xlu0 %v4851_v60  ;;  %1212 = vmin.xlane.f32.xlu1 %v1211_v35  ;;  %1009 = vst.msk [vmem:[#allocation2 + $0x80] sm:$0xff] %vm27_vm10, %v976_v58 }
 0x17c   :  { %994 = vst.msk [vmem:[#allocation2 + $0x8] sm:$0xff] %vm27_vm10, %v961_v11  ;;  %v1171_v1 = vpop.xlane.xlu1 %1170 }
 0x17d   :  { %v917_v35 = vpop.xlane.xlu0 %916  ;;  %v1233_v14 = vmin.f32 %v1041_v4, %v1171_v1  ;;  %v1412_v54 = vld [vmem:[#allocation3] sm:$0xff] }
 0x17e   :  { %v977_v42 = vmax.f32 %v785_v3, %v917_v35  ;;  %v1316_v13 = vld [vmem:[#allocation2] sm:$0xff]  ;;  %v1444_v17 = vadd.f32 %v1412_v54, %v1284_v32  ;;  %v1287_v35 = vld [vmem:[%s4736_s2 + $0x18] sm:$0xff] }
 0x17f   :  { %1209 = vmin.xlane.f32.xlu0 %v4854_v12  ;;  %v1348_v28 = vadd.f32 %v1316_v13, %v1284_v32  ;;  %1265 = vst.msk [vmem:[#allocation3 + $0x80] sm:$0xff] %vm27_vm10, %v1233_v14  ;;  %v772_v12 = vld [vmem:[#allocation2 + $0x20] sm:$0xff] }
 0x180   :  { %1010 = vst.msk [vmem:[#allocation2 + $0x88] sm:$0xff] %vm27_vm10, %v977_v42  ;;  %v1476_v29 = vmul.f32 2.0, %v1444_v17  ;;  %v1044_v42 = vld [vmem:[#allocation3 + $0x98] sm:$0xff] }
 0x181   :  { %v1380_v43 = vmul.f32 2.0, %v1348_v28 }
 0x182   :  { %v1508_v6 = vmin.f32 %v1476_v29, 9.999998e+13 }
 0x183   :  { %910 = vmax.xlane.f32.xlu0 %v909_v23  ;;  %v1285_v23 = vld [vmem:[%s4736_s2 + $0x8] sm:$0xff]  ;;  %v4518_v7 = vmax.f32 %v1380_v43, 1e-12 }
 0x184   :  { %v1317_v47 = vld [vmem:[#allocation2 + $0x8] sm:$0xff]  ;;  %v4522_v19 = vmax.f32 %v1508_v6, 1e-12 }
 0x185   :  { %v1349_v63 = vadd.f32 %v1317_v47, %v1285_v23  ;;  %2783 = vrsqrt.f32 %v4518_v7  ;;  %vm1574_vm0 = vcmp.eq.f32.partialorder %v4518_v7, inf  ;;  %vm1576_vm12 = vcmp.eq.f32.partialorder %v4518_v7, 0.0 }
 0x186   :  { %2785 = vrsqrt.f32 %v4522_v19  ;;  %vm1830_vm14 = vcmp.eq.f32.partialorder %v4522_v19, inf  ;;  %v1577_v54 = vand.u32 2147483648, %v4518_v7  ;;  %vm1832_vm1 = vcmp.eq.f32.partialorder %v4522_v19, 0.0 }
 0x187   :  { %958 = vmax.xlane.f32.xlu0 %v957_v38  ;;  %v1126_v38 = vpop.xlane.xlu1 %1125  ;;  %v1381_v26 = vmul.f32 2.0, %v1349_v63 }
 0x188   :  { %v1218_v44 = vmin.f32 %v1026_v21, %v1126_v38  ;;  %v1833_v21 = vand.u32 2147483648, %v4522_v19 }
 0x189   :  { %v4526_v34 = vmax.f32 %v1381_v26, 1e-12 }
 0x18a   :  { %1250 = vst.msk [vmem:[#allocation3 + $0x8] sm:$0xff] %vm27_vm10, %v1218_v44 }
 0x18b   :  { %1167 = vmin.xlane.f32.xlu0 %v1166_v52  ;;  %v1174_v52 = vpop.xlane.xlu0 %1173  ;;  %v872_v41 = vpop.xlane.xlu1 %871  ;;  %2787 = vrsqrt.f32 %v4526_v34  ;;  %vm1581_vm2 = vcmp.eq.f32.partialorder %v4526_v34, inf  ;;  %vm1583_vm13 = vcmp.eq.f32.partialorder %v4526_v34, 0.0 }
 0x18c   :  { %v1234_v5 = vmin.f32 %v1042_v22, %v1174_v52  ;;  %v962_v37 = vmax.f32 %v770_v39, %v872_v41 }
 0x18e   :  { %1266 = vst.msk [vmem:[#allocation3 + $0x88] sm:$0xff] %vm27_vm10, %v1234_v5  ;;  %995 = vst.msk [vmem:[#allocation2 + $0x10] sm:$0xff] %vm27_vm10, %v962_v37 }
 0x18f   :  { %1215 = vmin.xlane.f32.xlu0 %v4855_v61  ;;  %v1129_v0 = vpop.xlane.xlu0 %1128  ;;  %v920_v45 = vpop.xlane.xlu1 %919 }
 0x190   :  { %v1219_v46 = vmin.f32 %v1027_v40, %v1129_v0  ;;  %v978_v56 = vmax.f32 %v786_v50, %v920_v45  ;;  %v2784_v61 = vpop.eup %2783  ;;  %v788_v40 = vld [vmem:[#allocation2 + $0xa0] sm:$0xff] }
 0x191   :  { %v1413_v27 = vld [vmem:[#allocation3 + $0x8] sm:$0xff]  ;;  %v1573_v16 = vmul.f32 %v2784_v61, %v4518_v7  ;;  %v2786_v10 = vpop.eup %2785  ;;  %v1029_v0 = vld [vmem:[#allocation3 + $0x20] sm:$0xff]  ;;  %v1584_v61 = vand.u32 2147483648, %v4526_v34 }
 0x192   :  { %1251 = vst.msk [vmem:[#allocation3 + $0x10] sm:$0xff] %vm27_vm10, %v1219_v46  ;;  %v1445_v30 = vadd.f32 %v1413_v27, %v1285_v23  ;;  %1011 = vst.msk [vmem:[#allocation2 + $0x90] sm:$0xff] %vm27_vm10, %v978_v56  ;;  %v1829_v4 = vmul.f32 %v2786_v10, %v4522_v19 }
 0x193   :  { %v1132_v31 = vpop.xlane.xlu0 %1131  ;;  %v1177_v49 = vpop.xlane.xlu1 %1176  ;;  %v1575_v3 = vsel %vm1574_vm0, %v4518_v7, %v1573_v16 }
 0x194   :  { %v1220_v18 = vmin.f32 %v1028_v59, %v1132_v31  ;;  %v1477_v55 = vmul.f32 2.0, %v1445_v30  ;;  %v1235_v60 = vmin.f32 %v1043_v15, %v1177_v49  ;;  %v1831_v13 = vsel %vm1830_vm14, %v4522_v19, %v1829_v4  ;;  %v773_v19 = vld [vmem:[#allocation2 + $0x28] sm:$0xff]  ;;  %v1045_v15 = vld [vmem:[#allocation3 + $0xa0] sm:$0xff] }
 0x195   :  { %v1318_v51 = vld [vmem:[#allocation2 + $0x10] sm:$0xff]  ;;  %v4558_v38 = vsel %vm1832_vm1, %v1833_v21, %v1831_v13  ;;  %v4562_v52 = vsel %vm1576_vm12, %v1577_v54, %v1575_v3  ;;  %v2788_v44 = vpop.eup %2787  ;;  %v789_v49 = vld [vmem:[#allocation2 + $0xa8] sm:$0xff] }
 0x196   :  { %1252 = vst.msk [vmem:[#allocation3 + $0x18] sm:$0xff] %vm27_vm10, %v1220_v18  ;;  %v1509_v57 = vmin.f32 %v1477_v55, 9.999998e+13  ;;  %1267 = vst.msk [vmem:[#allocation3 + $0x90] sm:$0xff] %vm27_vm10, %v1235_v60  ;;  %v1350_v9 = vadd.f32 %v1318_v51, %v1286_v8  ;;  %v4566_v5 = vmax.f32 %v4562_v52, %v4558_v38  ;;  %v1580_v46 = vmul.f32 %v2788_v44, %v4526_v34  ;;  %v774_v51 = vld [vmem:[#allocation2 + $0x30] sm:$0xff]  ;;  %v1046_v3 = vld [vmem:[#allocation3 + $0xa8] sm:$0xff] }
 0x197   :  { %v875_v36 = vpop.xlane.xlu0 %874  ;;  %v878_v20 = vpop.xlane.xlu1 %877 }
 0x198   :  { %v963_v33 = vmax.f32 %v771_v53, %v875_v36  ;;  %v4541_v48 = vmax.f32 %v1509_v57, 1e-12  ;;  %v964_v11 = vmax.f32 %v772_v12, %v878_v20  ;;  %v1382_v1 = vmul.f32 2.0, %v1350_v9  ;;  %v1030_v12 = vld [vmem:[#allocation3 + $0x28] sm:$0xff] }
 0x199   :  { %v1414_v24 = vld [vmem:[#allocation3 + $0x10] sm:$0xff]  ;;  %v2084_v7 = vsub.f32 %v4562_v52, %v4566_v5  ;;  %v2180_v39 = vsub.f32 %v4558_v38, %v4566_v5 }
 0x19a   :  { %996 = vst.msk [vmem:[#allocation2 + $0x18] sm:$0xff] %vm27_vm10, %v963_v33  ;;  %v1446_v2 = vadd.f32 %v1414_v24, %v1286_v8  ;;  %2789 = vrsqrt.f32 %v4541_v48  ;;  %997 = vst.msk [vmem:[#allocation2 + $0x20] sm:$0xff] %vm27_vm10, %v964_v11  ;;  %v4556_v17 = vmax.f32 %v1382_v1, 1e-12  ;;  %v1582_v8 = vsel %vm1581_vm2, %v4526_v34, %v1580_v46 }
 0x19b   :  { %v923_v25 = vpop.xlane.xlu0 %922  ;;  %v926_v23 = vpop.xlane.xlu1 %925  ;;  %v2116_v50 = vmul.f32 1.442695, %v2084_v7  ;;  %v2212_v59 = vmul.f32 1.442695, %v2180_v39  ;;  %vm1837_vm11 = vcmp.eq.f32.partialorder %v4541_v48, inf  ;;  %v1840_v57 = vand.u32 2147483648, %v4541_v48 }
 0x19c   :  { %v979_v58 = vmax.f32 %v787_v62, %v923_v25  ;;  %v1478_v32 = vmul.f32 2.0, %v1446_v2  ;;  %2791 = vrsqrt.f32 %v4556_v17  ;;  %v980_v31 = vmax.f32 %v788_v40, %v926_v23 }
 0x19d   :  { %v1415_v14 = vld [vmem:[#allocation3 + $0x18] sm:$0xff]  ;;  %vm1839_vm5 = vcmp.eq.f32.partialorder %v4541_v48, 0.0  ;;  %v4597_v20 = vsel %vm1583_vm13, %v1584_v61, %v1582_v8  ;;  %vm1588_vm6 = vcmp.eq.f32.partialorder %v4556_v17, inf  ;;  %vm1590_vm4 = vcmp.eq.f32.partialorder %v4556_v17, 0.0 }
 0x19e   :  { %1012 = vst.msk [vmem:[#allocation2 + $0x98] sm:$0xff] %vm27_vm10, %v979_v58  ;;  %v1510_v22 = vmin.f32 %v1478_v32, 9.999998e+13  ;;  %v1447_v29 = vadd.f32 %v1415_v14, %v1287_v35  ;;  %1013 = vst.msk [vmem:[#allocation2 + $0xa0] sm:$0xff] %vm27_vm10, %v980_v31  ;;  %v790_v32 = vld [vmem:[#allocation2 + $0xb0] sm:$0xff]  ;;  %v1591_v14 = vand.u32 2147483648, %v4556_v17 }
 0x19f   :  { %v1180_v28 = vpop.xlane.xlu0 %1179  ;;  %v1135_v41 = vpop.xlane.xlu1 %1134 }
 0x1a0   :  { %v1236_v43 = vmin.f32 %v1044_v42, %v1180_v28  ;;  %v4568_v47 = vmax.f32 %v1510_v22, 1e-12  ;;  %v1479_v6 = vmul.f32 2.0, %v1447_v29  ;;  %v1221_v18 = vmin.f32 %v1029_v0, %v1135_v41  ;;  %v775_v0 = vld [vmem:[#allocation2 + $0x38] sm:$0xff] }
 0x1a1   :  { %v1319_v63 = vld [vmem:[#allocation2 + $0x18] sm:$0xff] }
 0x1a2   :  { %1268 = vst.msk [vmem:[#allocation3 + $0x98] sm:$0xff] %vm27_vm10, %v1236_v43  ;;  %2793 = vrsqrt.f32 %v4568_v47  ;;  %v1511_v37 = vmin.f32 %v1479_v6, 9.999998e+13  ;;  %v1351_v45 = vadd.f32 %v1319_v63, %v1287_v35  ;;  %1253 = vst.msk [vmem:[#allocation3 + $0x20] sm:$0xff] %vm27_vm10, %v1221_v18  ;;  %vm1844_vm7 = vcmp.eq.f32.partialorder %v4568_v47, inf  ;;  %v1047_v18 = vld [vmem:[#allocation3 + $0xb0] sm:$0xff] }
 0x1a3   :  { %v881_v26 = vpop.xlane.xlu0 %880  ;;  %2795 = vpow2.f32 %v2116_v50  ;;  %v1183_v30 = vpop.xlane.xlu1 %1182  ;;  %v1847_v54 = vand.u32 2147483648, %v4568_v47  ;;  %vm1846_vm3 = vcmp.eq.f32.partialorder %v4568_v47, 0.0 }
 0x1a4   :  { %v4578_v56 = vmax.f32 %v1511_v37, 1e-12  ;;  %v965_v27 = vmax.f32 %v773_v19, %v881_v26  ;;  %v1383_v53 = vmul.f32 2.0, %v1351_v45  ;;  %v2790_v55 = vpop.eup %2789  ;;  %2797 = vpow2.f32 %v2212_v59 }
 0x1a5   :  { %v1836_v60 = vmul.f32 %v2790_v55, %v4541_v48  ;;  %v1237_v62 = vmin.f32 %v1045_v15, %v1183_v30 }
 0x1a6   :  { %998 = vst.msk [vmem:[#allocation2 + $0x28] sm:$0xff] %vm27_vm10, %v965_v27  ;;  %2799 = vrsqrt.f32 %v4578_v56  ;;  %v4587_v33 = vmax.f32 %v1383_v53, 1e-12  ;;  %v2792_v16 = vpop.eup %2791  ;;  %vm1851_vm9 = vcmp.eq.f32.partialorder %v4578_v56, inf  ;;  %vm1853_vm8 = vcmp.eq.f32.partialorder %v4578_v56, 0.0  ;;  %v791_v27 = vld [vmem:[#allocation2 + $0xb8] sm:$0xff] }
 0x1a7   :  { %v929_v36 = vpop.xlane.xlu0 %928  ;;  %v1838_v2 = vsel %vm1837_vm11, %v4541_v48, %v1836_v60  ;;  %1269 = vst.msk [vmem:[#allocation3 + $0xa0] sm:$0xff] %vm27_vm10, %v1237_v62  ;;  %v884_v25 = vpop.xlane.xlu1 %883  ;;  %v1587_v58 = vmul.f32 %v2792_v16, %v4556_v17  ;;  %v776_v16 = vld [vmem:[#allocation2 + $0x40] sm:$0xff] }
 0x1a8   :  { %v981_v24 = vmax.f32 %v789_v49, %v929_v36  ;;  %2801 = vrsqrt.f32 %v4587_v33  ;;  %v4599_v10 = vsel %vm1839_vm5, %v1840_v57, %v1838_v2  ;;  %v966_v48 = vmax.f32 %v774_v51, %v884_v25  ;;  %v1032_v51 = vld [vmem:[#allocation3 + $0x38] sm:$0xff] }
 0x1a9   :  { %v4605_v4 = vmax.f32 %v4597_v20, %v4599_v10  ;;  %v1589_v35 = vsel %vm1588_vm6, %v4556_v17, %v1587_v58  ;;  %v1854_v36 = vand.u32 2147483648, %v4578_v56  ;;  %vm1595_vm15 = vcmp.eq.f32.partialorder %v4587_v33, inf }
 0x1aa   :  { %1014 = vst.msk [vmem:[#allocation2 + $0xa8] sm:$0xff] %vm27_vm10, %v981_v24  ;;  %999 = vst.msk [vmem:[#allocation2 + $0x30] sm:$0xff] %vm27_vm10, %v966_v48  ;;  %v4626_v40 = vsel %vm1590_vm4, %v1591_v14, %v1589_v35  ;;  %vm1597_vm0 = vcmp.eq.f32.partialorder %v4587_v33, 0.0  ;;  %v1598_v55 = vand.u32 2147483648, %v4587_v33  ;;  %v1048_v48 = vld [vmem:[#allocation3 + $0xb8] sm:$0xff] }
 0x1ab   :  { %v1138_v9 = vpop.xlane.xlu0 %1137  ;;  %v2085_v42 = vsub.f32 %v4597_v20, %v4605_v4  ;;  %v2181_v21 = vsub.f32 %v4599_v10, %v4605_v4  ;;  %v932_v22 = vpop.xlane.xlu1 %931 }
 0x1ac   :  { %v1222_v11 = vmin.f32 %v1030_v12, %v1138_v9  ;;  %v2794_v34 = vpop.eup %2793  ;;  %v982_v29 = vmax.f32 %v790_v32, %v932_v22 }
 0x1ad   :  { %v1843_v1 = vmul.f32 %v2794_v34, %v4568_v47  ;;  %v2796_v43 = vpop.eup %2795  ;;  %v2118_v44 = vmul.f32 1.442695, %v2085_v42  ;;  %v2214_v6 = vmul.f32 1.442695, %v2181_v21 }
 0x1ae   :  { %1254 = vst.msk [vmem:[#allocation3 + $0x28] sm:$0xff] %vm27_vm10, %v1222_v11  ;;  %v2798_v7 = vpop.eup %2797  ;;  %1015 = vst.msk [vmem:[#allocation2 + $0xb0] sm:$0xff] %vm27_vm10, %v982_v29 }
 0x1af   :  { %v1186_v13 = vpop.xlane.xlu0 %1185  ;;  %v1845_v28 = vsel %vm1844_vm7, %v4568_v47, %v1843_v1  ;;  %v1031_v47 = vld [vmem:[#allocation3 + $0x30] sm:$0xff]  ;;  %v2276_v19 = vadd.f32 %v2798_v7, %v2796_v43  ;;  %2803 = vpow2.f32 %v2118_v44  ;;  %v1141_v26 = vpop.xlane.xlu1 %1140  ;;  %v777_v44 = vld [vmem:[#allocation2 + $0x48] sm:$0xff] }
 0x1b0   :  { %v1238_v23 = vmin.f32 %v1046_v3, %v1186_v13  ;;  %v4622_v63 = vsel %vm1846_vm3, %v1847_v54, %v1845_v28  ;;  %v2800_v41 = vpop.eup %2799  ;;  %2805 = vpow2.f32 %v2214_v6  ;;  %v1223_v45 = vmin.f32 %v1031_v47, %v1141_v26  ;;  %v792_v3 = vld [vmem:[#allocation2 + $0xc0] sm:$0xff] }
 0x1b1   :  { %v4630_v39 = vmax.f32 %v4626_v40, %v4622_v63  ;;  %v1850_v50 = vmul.f32 %v2800_v41, %v4578_v56  ;;  %2807 = vlog2.f32 %v2276_v19 }
 0x1b2   :  { %1270 = vst.msk [vmem:[#allocation3 + $0xa8] sm:$0xff] %vm27_vm10, %v1238_v23  ;;  %v2802_v59 = vpop.eup %2801  ;;  %1255 = vst.msk [vmem:[#allocation3 + $0x30] sm:$0xff] %vm27_vm10, %v1223_v45  ;;  %v1033_v23 = vld [vmem:[#allocation3 + $0x40] sm:$0xff] }
 0x1b3   :  { %v887_v17 = vpop.xlane.xlu0 %886  ;;  %v2086_v46 = vsub.f32 %v4626_v40, %v4630_v39  ;;  %v2182_v37 = vsub.f32 %v4622_v63, %v4630_v39  ;;  %v1852_v30 = vsel %vm1851_vm9, %v4578_v56, %v1850_v50  ;;  %v1594_v49 = vmul.f32 %v2802_v59, %v4587_v33  ;;  %v1189_v8 = vpop.xlane.xlu1 %1188 }
 0x1b4   :  { %v967_v31 = vmax.f32 %v775_v0, %v887_v17  ;;  %v1239_v12 = vmin.f32 %v1047_v18, %v1189_v8  ;;  %v4654_v57 = vsel %vm1853_vm8, %v1854_v36, %v1852_v30 }
 0x1b5   :  { %v2120_v15 = vmul.f32 1.442695, %v2086_v46  ;;  %v2216_v53 = vmul.f32 1.442695, %v2182_v37  ;;  %v1596_v62 = vsel %vm1595_vm15, %v4587_v33, %v1594_v49  ;;  %v1049_v46 = vld [vmem:[#allocation3 + $0xc0] sm:$0xff]  ;;  %v793_v37 = vld [vmem:[#allocation2 + $0xc8] sm:$0xff] }
 0x1b6   :  { %1000 = vst.msk [vmem:[#allocation2 + $0x38] sm:$0xff] %vm27_vm10, %v967_v31  ;;  %v4656_v24 = vsel %vm1597_vm0, %v1598_v55, %v1596_v62  ;;  %1271 = vst.msk [vmem:[#allocation3 + $0xb0] sm:$0xff] %vm27_vm10, %v1239_v12  ;;  %v1050_v12 = vld [vmem:[#allocation3 + $0xc8] sm:$0xff] }
 0x1b7   :  { %v935_v60 = vpop.xlane.xlu0 %934  ;;  %2809 = vpow2.f32 %v2120_v15  ;;  %v4660_v2 = vmax.f32 %v4656_v24, %v4654_v57  ;;  %v890_v9 = vpop.xlane.xlu1 %889  ;;  %v778_v15 = vld [vmem:[#allocation2 + $0x50] sm:$0xff] }
 0x1b8   :  { %v983_v61 = vmax.f32 %v791_v27, %v935_v60  ;;  %2811 = vpow2.f32 %v2216_v53  ;;  %v968_v11 = vmax.f32 %v776_v16, %v890_v9 }
 0x1b9   :  { %v2087_v25 = vsub.f32 %v4656_v24, %v4660_v2  ;;  %v2183_v56 = vsub.f32 %v4654_v57, %v4660_v2  ;;  %v2804_v34 = vpop.eup %2803 }
 0x1ba   :  { %1016 = vst.msk [vmem:[#allocation2 + $0xb8] sm:$0xff] %vm27_vm10, %v983_v61  ;;  %v2806_v32 = vpop.eup %2805  ;;  %1001 = vst.msk [vmem:[#allocation2 + $0x40] sm:$0xff] %vm27_vm10, %v968_v11  ;;  %v794_v61 = vld [vmem:[#allocation2 + $0xd0] sm:$0xff] }
 0x1bb   :  { %v1144_v33 = vpop.xlane.xlu0 %1143  ;;  %v2122_v1 = vmul.f32 1.442695, %v2087_v25  ;;  %v2218_v35 = vmul.f32 1.442695, %v2183_v56  ;;  %v2808_v14 = vpop.eup %2807  ;;  %v2277_v42 = vadd.f32 %v2806_v32, %v2804_v34 }
 0x1bc   :  { %v1224_v58 = vmin.f32 %v1032_v51, %v1144_v33  ;;  %v938_v54 = vpop.xlane.xlu1 %937  ;;  %v2309_v13 = vmul.f32 0.6931472, %v2808_v14 }
 0x1bd   :  { %2813 = vpow2.f32 %v2122_v1  ;;  %v984_v28 = vmax.f32 %v792_v3, %v938_v54  ;;  %v779_v3 = vld [vmem:[#allocation2 + $0x58] sm:$0xff] }
 0x1be   :  { %1256 = vst.msk [vmem:[#allocation3 + $0x38] sm:$0xff] %vm27_vm10, %v1224_v58  ;;  %2815 = vlog2.f32 %v2277_v42  ;;  %v2372_v43 = vadd.f32 %v2309_v13, %v4566_v5  ;;  %v1051_v13 = vld [vmem:[#allocation3 + $0xd0] sm:$0xff] }
 0x1bf   :  { %v1192_v21 = vpop.xlane.xlu0 %1191  ;;  %2817 = vpow2.f32 %v2218_v35  ;;  %1017 = vst.msk [vmem:[#allocation2 + $0xc0] sm:$0xff] %vm27_vm10, %v984_v28 }
 0x1c0   :  { %v1240_v22 = vmin.f32 %v1048_v48, %v1192_v21  ;;  %v1147_v7 = vpop.xlane.xlu1 %1146  ;;  %v2404_v0 = vsub.f32 %v4562_v52, %v2372_v43  ;;  %v2468_v41 = vsub.f32 %v4558_v38, %v2372_v43  ;;  %v1034_v52 = vld [vmem:[#allocation3 + $0x48] sm:$0xff]  ;;  %v1035_v48 = vld [vmem:[#allocation3 + $0x50] sm:$0xff] }
 0x1c1   :  { %v2810_v29 = vpop.eup %2809  ;;  %v1225_v26 = vmin.f32 %v1033_v23, %v1147_v7  ;;  %v780_v7 = vld [vmem:[#allocation2 + $0x60] sm:$0xff] }
 0x1c2   :  { %1272 = vst.msk [vmem:[#allocation3 + $0xb8] sm:$0xff] %vm27_vm10, %v1240_v22  ;;  %v2812_v6 = vpop.eup %2811  ;;  %v2436_v50 = vmul.f32 -0.3, %v2404_v0  ;;  %v2500_v5 = vmul.f32 0.7, %v2468_v41  ;;  %v795_v22 = vld [vmem:[#allocation2 + $0xd8] sm:$0xff] }
 0x1c3   :  { %v893_v47 = vpop.xlane.xlu0 %892  ;;  %v2278_v19 = vadd.f32 %v2812_v6, %v2810_v29  ;;  %1257 = vst.msk [vmem:[#allocation3 + $0x40] sm:$0xff] %vm27_vm10, %v1225_v26 }
 0x1c4   :  { %v969_v17 = vmax.f32 %v777_v44, %v893_v47  ;;  %v2532_v31 = vsub.f32 %v2436_v50, %v2500_v5 }
 0x1c5   :  { %2819 = vlog2.f32 %v2278_v19 }
 0x1c6   :  { %1002 = vst.msk [vmem:[#allocation2 + $0x48] sm:$0xff] %vm27_vm10, %v969_v17  ;;  %2695 = vst.msk [vmem:[%s4735_s6] sm:$0xff] %vm27_vm10, %v2532_v31 }
 0x1c7   :  { %v2814_v38 = vpop.eup %2813 }
 0x1c8   :  { %v2816_v53 = vpop.eup %2815 }
 0x1c9   :  { %v2818_v36 = vpop.eup %2817  ;;  %v2311_v55 = vmul.f32 0.6931472, %v2816_v53 }
 0x1ca   :  { %v2279_v62 = vadd.f32 %v2818_v36, %v2814_v38  ;;  %v797_v36 = vld [vmem:[#allocation2 + $0xe8] sm:$0xff] }
 0x1cb   :  { %v2373_v51 = vadd.f32 %v2311_v55, %v4605_v4 }
 0x1cc   :  { %2821 = vlog2.f32 %v2279_v62 }
 0x1cd   :  { %v2405_v25 = vsub.f32 %v4597_v20, %v2373_v51  ;;  %v2469_v56 = vsub.f32 %v4599_v10, %v2373_v51 }
 0x1cf   :  { %v2820_v9 = vpop.eup %2819  ;;  %v2437_v32 = vmul.f32 -0.3, %v2405_v25  ;;  %v2501_v1 = vmul.f32 0.7, %v2469_v56  ;;  %v1054_v25 = vld [vmem:[#allocation3 + $0xe8] sm:$0xff]  ;;  %v798_v56 = vld [vmem:[#allocation2 + $0xf0] sm:$0xff] }
 0x1d0   :  { %v2313_v34 = vmul.f32 0.6931472, %v2820_v9 }
 0x1d1   :  { %v2533_v42 = vsub.f32 %v2437_v32, %v2501_v1  ;;  %v783_v32 = vld [vmem:[#allocation2 + $0x78] sm:$0xff] }
 0x1d2   :  { %v2374_v4 = vadd.f32 %v2313_v34, %v4630_v39 }
 0x1d3   :  { %2696 = vst.msk [vmem:[%s4735_s6 + $0x8] sm:$0xff] %vm27_vm10, %v2533_v42  ;;  %v1055_v42 = vld [vmem:[#allocation3 + $0xf0] sm:$0xff] }
 0x1d4   :  { %v2406_v10 = vsub.f32 %v4626_v40, %v2374_v4  ;;  %v2470_v54 = vsub.f32 %v4622_v63, %v2374_v4  ;;  %v1036_v63 = vld [vmem:[#allocation3 + $0x58] sm:$0xff] }
 0x1d6   :  { %v1195_v59 = vpop.xlane.xlu1 %1194  ;;  %v2438_v39 = vmul.f32 -0.3, %v2406_v10  ;;  %v2502_v28 = vmul.f32 0.7, %v2470_v54  ;;  %v2822_v40 = vpop.eup %2821 }
 0x1d7   :  { %v1241_v18 = vmin.f32 %v1049_v46, %v1195_v59  ;;  %v2315_v47 = vmul.f32 0.6931472, %v2822_v40  ;;  %v1052_v46 = vld [vmem:[#allocation3 + $0xd8] sm:$0xff] }
 0x1d8   :  { %v2534_v6 = vsub.f32 %v2438_v39, %v2502_v28 }
 0x1d9   :  { %1273 = vst.msk [vmem:[#allocation3 + $0xc0] sm:$0xff] %vm27_vm10, %v1241_v18  ;;  %v2375_v19 = vadd.f32 %v2315_v47, %v4660_v2  ;;  %v781_v2 = vld [vmem:[#allocation2 + $0x68] sm:$0xff] }
 0x1da   :  { %v896_v49 = vpop.xlane.xlu1 %895  ;;  %2697 = vst.msk [vmem:[%s4735_s6 + $0x10] sm:$0xff] %vm27_vm10, %v2534_v6 }
 0x1db   :  { %v970_v60 = vmax.f32 %v778_v15, %v896_v49  ;;  %v2407_v50 = vsub.f32 %v4656_v24, %v2375_v19  ;;  %v2471_v5 = vsub.f32 %v4654_v57, %v2375_v19  ;;  %v1037_v15 = vld [vmem:[#allocation3 + $0x60] sm:$0xff] }
 0x1dc   :  { %v1053_v49 = vld [vmem:[#allocation3 + $0xe0] sm:$0xff] }
 0x1dd   :  { %1003 = vst.msk [vmem:[#allocation2 + $0x50] sm:$0xff] %vm27_vm10, %v970_v60  ;;  %v2439_v31 = vmul.f32 -0.3, %v2407_v50  ;;  %v2503_v18 = vmul.f32 0.7, %v2471_v5 }
 0x1de   :  { %v944_v33 = vpop.xlane.xlu1 %943 }
 0x1df   :  { %v986_v11 = vmax.f32 %v794_v61, %v944_v33  ;;  %v2535_v38 = vsub.f32 %v2439_v31, %v2503_v18  ;;  %v782_v61 = vld [vmem:[#allocation2 + $0x70] sm:$0xff] }
 0x1e1   :  { %1019 = vst.msk [vmem:[#allocation2 + $0xd0] sm:$0xff] %vm27_vm10, %v986_v11  ;;  %2698 = vst.msk [vmem:[%s4735_s6 + $0x18] sm:$0xff] %vm27_vm10, %v2535_v38 }
 0x1e4   :  { %v941_v45 = vpop.xlane.xlu0 %940  ;;  %v1153_v35 = vpop.xlane.xlu1 %1152 }
 0x1e5   :  { %v985_v27 = vmax.f32 %v793_v37, %v941_v45  ;;  %v1227_v21 = vmin.f32 %v1035_v48, %v1153_v35  ;;  %v796_v37 = vld [vmem:[#allocation2 + $0xe0] sm:$0xff] }
 0x1e7   :  { %1018 = vst.msk [vmem:[#allocation2 + $0xc8] sm:$0xff] %vm27_vm10, %v985_v27  ;;  %1259 = vst.msk [vmem:[#allocation3 + $0x50] sm:$0xff] %vm27_vm10, %v1227_v21  ;;  %v799_v21 = vld [vmem:[#allocation2 + $0xf8] sm:$0xff] }
 0x1e8   :  { %v1150_v30 = vpop.xlane.xlu0 %1149  ;;  %v1201_v23 = vpop.xlane.xlu1 %1200 }
 0x1e9   :  { %v1226_v8 = vmin.f32 %v1034_v52, %v1150_v30  ;;  %v1243_v43 = vmin.f32 %v1051_v13, %v1201_v23  ;;  %v1056_v23 = vld [vmem:[#allocation3 + $0xf8] sm:$0xff] }
 0x1eb   :  { %1258 = vst.msk [vmem:[#allocation3 + $0x48] sm:$0xff] %vm27_vm10, %v1226_v8  ;;  %1275 = vst.msk [vmem:[#allocation3 + $0xd0] sm:$0xff] %vm27_vm10, %v1243_v43 }
 0x1ec   :  { %v1198_v16 = vpop.xlane.xlu0 %1197  ;;  %v902_v41 = vpop.xlane.xlu1 %901 }
 0x1ed   :  { %v1242_v58 = vmin.f32 %v1050_v12, %v1198_v16  ;;  %v972_v17 = vmax.f32 %v780_v7, %v902_v41  ;;  %v1038_v12 = vld [vmem:[#allocation3 + $0x68] sm:$0xff] }
 0x1ef   :  { %1274 = vst.msk [vmem:[#allocation3 + $0xc8] sm:$0xff] %vm27_vm10, %v1242_v58  ;;  %1005 = vst.msk [vmem:[#allocation2 + $0x60] sm:$0xff] %vm27_vm10, %v972_v17 }
 0x1f0   :  { %v899_v14 = vpop.xlane.xlu0 %898  ;;  %v950_v45 = vpop.xlane.xlu1 %949 }
 0x1f1   :  { %v971_v20 = vmax.f32 %v779_v3, %v899_v14  ;;  %v988_v52 = vmax.f32 %v796_v37, %v950_v45  ;;  %v1039_v3 = vld [vmem:[#allocation3 + $0x70] sm:$0xff] }
 0x1f3   :  { %1004 = vst.msk [vmem:[#allocation2 + $0x58] sm:$0xff] %vm27_vm10, %v971_v20  ;;  %1021 = vst.msk [vmem:[#allocation2 + $0xe0] sm:$0xff] %vm27_vm10, %v988_v52 }
 0x1f4   :  { %v947_v29 = vpop.xlane.xlu0 %946  ;;  %v1159_v24 = vpop.xlane.xlu1 %1158 }
 0x1f5   :  { %v987_v44 = vmax.f32 %v795_v22, %v947_v29  ;;  %v1229_v57 = vmin.f32 %v1037_v15, %v1159_v24  ;;  %v1040_v22 = vld [vmem:[#allocation3 + $0x78] sm:$0xff] }
 0x1f7   :  { %1020 = vst.msk [vmem:[#allocation2 + $0xd8] sm:$0xff] %vm27_vm10, %v987_v44  ;;  %1261 = vst.msk [vmem:[#allocation3 + $0x60] sm:$0xff] %vm27_vm10, %v1229_v57 }
 0x1f8   :  { %v1156_v0 = vpop.xlane.xlu0 %1155  ;;  %v1207_v55 = vpop.xlane.xlu1 %1206 }
 0x1f9   :  { %v1228_v26 = vmin.f32 %v1036_v63, %v1156_v0  ;;  %v1245_v60 = vmin.f32 %v1053_v49, %v1207_v55 }
 0x1fb   :  { %1260 = vst.msk [vmem:[#allocation3 + $0x58] sm:$0xff] %vm27_vm10, %v1228_v26  ;;  %1277 = vst.msk [vmem:[#allocation3 + $0xe0] sm:$0xff] %vm27_vm10, %v1245_v60 }
 0x1fc   :  { %v1204_v59 = vpop.xlane.xlu0 %1203  ;;  %v908_v16 = vpop.xlane.xlu1 %907 }
 0x1fd   :  { %v1244_v27 = vmin.f32 %v1052_v46, %v1204_v59  ;;  %v974_v9 = vmax.f32 %v782_v61, %v908_v16 }
 0x1ff   :  { %1276 = vst.msk [vmem:[#allocation3 + $0xd8] sm:$0xff] %vm27_vm10, %v1244_v27  ;;  %1007 = vst.msk [vmem:[#allocation2 + $0x70] sm:$0xff] %vm27_vm10, %v974_v9 }
 0x200   :  { %v905_v53 = vpop.xlane.xlu0 %904  ;;  %v956_v11 = vpop.xlane.xlu1 %955 }
 0x201   :  { %v973_v30 = vmax.f32 %v781_v2, %v905_v53  ;;  %v990_v48 = vmax.f32 %v798_v56, %v956_v11 }
 0x203   :  { %1006 = vst.msk [vmem:[#allocation2 + $0x68] sm:$0xff] %vm27_vm10, %v973_v30  ;;  %1023 = vst.msk [vmem:[#allocation2 + $0xf0] sm:$0xff] %vm27_vm10, %v990_v48 }
 0x204   :  { %v953_v8 = vpop.xlane.xlu0 %952  ;;  %v1165_v1 = vpop.xlane.xlu1 %1164 }
 0x205   :  { %v989_v62 = vmax.f32 %v797_v36, %v953_v8  ;;  %v1231_v35 = vmin.f32 %v1039_v3, %v1165_v1 }
 0x207   :  { %1022 = vst.msk [vmem:[#allocation2 + $0xe8] sm:$0xff] %vm27_vm10, %v989_v62  ;;  %1263 = vst.msk [vmem:[#allocation3 + $0x70] sm:$0xff] %vm27_vm10, %v1231_v35 }
 0x208   :  { %v1162_v51 = vpop.xlane.xlu0 %1161  ;;  %v1213_v20 = vpop.xlane.xlu1 %1212 }
 0x209   :  { %v1230_v33 = vmin.f32 %v1038_v12, %v1162_v51  ;;  %v1247_v54 = vmin.f32 %v1055_v42, %v1213_v20 }
 0x20b   :  { %1262 = vst.msk [vmem:[#allocation3 + $0x68] sm:$0xff] %vm27_vm10, %v1230_v33  ;;  %1279 = vst.msk [vmem:[#allocation3 + $0xf0] sm:$0xff] %vm27_vm10, %v1247_v54 }
 0x20c   :  { %v1210_v58 = vpop.xlane.xlu0 %1209 }
 0x20d   :  { %v1246_v34 = vmin.f32 %v1054_v25, %v1210_v58 }
 0x20f   :  { %1278 = vst.msk [vmem:[#allocation3 + $0xe8] sm:$0xff] %vm27_vm10, %v1246_v34 }
 0x210   :  { %v911_v4 = vpop.xlane.xlu0 %910 }
 0x211   :  { %v975_v14 = vmax.f32 %v783_v32, %v911_v4 }
 0x213   :  { %1008 = vst.msk [vmem:[#allocation2 + $0x78] sm:$0xff] %vm27_vm10, %v975_v14 }
 0x214   :  { %v959_v10 = vpop.xlane.xlu0 %958 }
 0x215   :  { %v991_v13 = vmax.f32 %v799_v21, %v959_v10 }
 0x217   :  { %1024 = vst.msk [vmem:[#allocation2 + $0xf8] sm:$0xff] %vm27_vm10, %v991_v13 }
 0x218   :  { %v1168_v39 = vpop.xlane.xlu0 %1167 }
 0x219   :  { %v1232_v28 = vmin.f32 %v1040_v22, %v1168_v39 }
 0x21b   :  { %1264 = vst.msk [vmem:[#allocation3 + $0x78] sm:$0xff] %vm27_vm10, %v1232_v28 }
 0x21c   :  { %v1216_v29 = vpop.xlane.xlu0 %1215 }
 0x21d   :  { %v1248_v43 = vmin.f32 %v1056_v23, %v1216_v29 }
 0x21f   :  { %1280 = vst.msk [vmem:[#allocation3 + $0xf8] sm:$0xff] %vm27_vm10, %v1248_v43 }

</bundles_post_ra>
